<compile_context>
chip_gen: v5e
topology: v5e:2x2
jax: 0.10.0
libtpu: 0.0.40
codegen_flags: <defaults>
</compile_context>

<pallas_src>
import functools

import jax
import jax.numpy as jnp
from jax.experimental import pallas as pl
from jax.experimental.pallas import tpu as pltpu

EPS = 1e-8


def _vmem_budget_bytes():
    """~3/4 of physical VMEM: ~96 MiB on v5e/v6e (128 MiB), ~48 MiB on v7x (64 MiB)."""
    cap = 64 * 1024 * 1024
    try:
        cap = int(pltpu.get_tpu_info().vmem_capacity_bytes)
    except Exception:
        pass
    return (cap * 3) // 4


def _row_tile(n, want):
    """Tile for a tiled leading axis: whole array if it fits one block, else a multiple of 8."""
    want = max(8, int(want))
    if n <= want:
        return n
    return max(8, (want // 8) * 8)


# ---------------------------------------------------------------------------
# Kernel 1: linear projection + per-row l2 normalization (img_enc)
#   bf16 MXU matmul, f32 accumulate, rsqrt (EUP) normalize, bf16 output.
# ---------------------------------------------------------------------------
def _linear_l2norm_kernel(x_ref, w_ref, b_ref, o_ref):
    y = jnp.dot(x_ref[...].astype(jnp.bfloat16), w_ref[...],
                preferred_element_type=jnp.float32)
    y = y + b_ref[...]
    y = y * jax.lax.rsqrt(jnp.sum(y * y, axis=-1, keepdims=True) + EPS)
    o_ref[...] = y.astype(o_ref.dtype)


def linear_l2norm(x, w_bf16, b, *, out_dtype=jnp.bfloat16, tm_cap=512):
    # x: (N, Din) f32, w: (Din, Dout) bf16, b: (1, Dout) f32 -> (N, Dout) bf16
    N, Din = x.shape
    Dout = w_bf16.shape[1]
    budget = _vmem_budget_bytes()
    resident = Din * Dout * 2 + Dout * 4
    per_row = 2 * Din * 4 + 2 * Dout * 2 + Dout * 4      # db input + db output + f32 y
    tm = _row_tile(N, min(tm_cap, max(8, (budget - resident) // max(per_row, 1))))
    return pl.pallas_call(
        _linear_l2norm_kernel,
        out_shape=jax.ShapeDtypeStruct((N, Dout), out_dtype),
        grid=(pl.cdiv(N, tm),),
        in_specs=[
            pl.BlockSpec((tm, Din), lambda i: (i, 0)),     # row tile
            pl.BlockSpec((Din, Dout), lambda i: (0, 0)),   # weights, resident
            pl.BlockSpec((1, Dout), lambda i: (0, 0)),     # bias, resident
        ],
        out_specs=pl.BlockSpec((tm, Dout), lambda i: (i, 0)),
        compiler_params=pltpu.CompilerParams(
            dimension_semantics=("parallel",),
            vmem_limit_bytes=budget),
    )(x, w_bf16, b)


# ---------------------------------------------------------------------------
# Kernel 2 (FUSED cap_enc + agg_enc): per-word Linear + l2norm, length-masked
# mean over words, final l2norm -- per-word embeddings never leave VMEM.
# ---------------------------------------------------------------------------
def _cap_encode_agg_kernel(wv_ref, len_ref, w_ref, b_ref, o_ref):
    tc, L, Dw = wv_ref.shape
    x = wv_ref[...].reshape(tc * L, Dw).astype(jnp.bfloat16)
    y = jnp.dot(x, w_ref[...], preferred_element_type=jnp.float32) + b_ref[...]
    y = y * jax.lax.rsqrt(jnp.sum(y * y, axis=-1, keepdims=True) + EPS)   # per-word l2
    y = y.reshape(tc, L, -1)
    lens = len_ref[...]                                        # (tc, 1) int32
    iota = jax.lax.broadcasted_iota(jnp.int32, (tc, L), 1)
    mask = (iota < lens).astype(jnp.float32)                   # (tc, L)
    s = jnp.sum(y * mask[:, :, None], axis=1)                  # (tc, E) masked word sum
    mean = s / jnp.maximum(lens.astype(jnp.float32), 1.0)
    mean = mean * jax.lax.rsqrt(jnp.sum(mean * mean, axis=-1, keepdims=True) + EPS)
    o_ref[...] = mean.astype(o_ref.dtype)


def caption_encode_aggregate(word_vecs, cap_lens, w_bf16, b, *,
                             out_dtype=jnp.bfloat16, tc_cap=256):
    # word_vecs: (B, L, Dw) f32, cap_lens: (B,) -> (B, E) bf16 (unit-norm caption globals)
    B, L, Dw = word_vecs.shape
    E = w_bf16.shape[1]
    lens = cap_lens.astype(jnp.int32).reshape(B, 1)
    budget = _vmem_budget_bytes()
    resident = Dw * E * 2 + E * 4
    per_cap = 2 * L * Dw * 4 + 2 * L * E * 4 + 2 * E * 2 + 64  # db input + f32 temps + db out
    tc = _row_tile(B, min(tc_cap, max(8, (budget // 2 - resident) // max(per_cap, 1))))
    return pl.pallas_call(
        _cap_encode_agg_kernel,
        out_shape=jax.ShapeDtypeStruct((B, E), out_dtype),
        grid=(pl.cdiv(B, tc),),
        in_specs=[
            pl.BlockSpec((tc, L, Dw), lambda i: (i, 0, 0)),    # caption tile of word vecs
            pl.BlockSpec((tc, 1), lambda i: (i, 0)),           # lengths
            pl.BlockSpec((Dw, E), lambda i: (0, 0)),           # weights, resident
            pl.BlockSpec((1, E), lambda i: (0, 0)),            # bias, resident
        ],
        out_specs=pl.BlockSpec((tc, E), lambda i: (i, 0)),
        compiler_params=pltpu.CompilerParams(
            dimension_semantics=("parallel",),
            vmem_limit_bytes=budget),
    )(word_vecs, lens, w_bf16, b)


# ---------------------------------------------------------------------------
# Kernel 3: t2i cross-attention + pairwise cosine similarity.
#   sim[t, c] = cos( q_c , softmax_r(smooth * q_c.k_tr) K_t )
#   Flat QK^T matmul (ti*R, E)@(E, C); (ti, R, C) layout -> lane-dense everywhere,
#   no transposes; ||w||^2 via per-image Gram matrices (no (ti,C,E) tensor).
# ---------------------------------------------------------------------------
def _t2i_sim_kernel(q_ref, k_ref, o_ref, *, smooth):
    q = q_ref[...]                                   # (C, E) bf16, unit-norm rows
    k = k_ref[...]                                   # (ti, R, E) bf16, unit-norm rows
    ti, R, E = k.shape
    # ONE flat MXU matmul, lane dim = C (dense), contraction = E
    raw = jax.lax.dot_general(k.reshape(ti * R, E), q,
                              (((1,), (1,)), ((), ())),
                              preferred_element_type=jnp.float32)     # (ti*R, C)
    s = raw.reshape(ti, R, C := q.shape[0])          # leading-dim split, no relayout
    # per-image, per-caption softmax over regions (axis=1), stable
    m = jnp.max(s, axis=1, keepdims=True)
    p = jnp.exp((s - m) * smooth)
    a = p * pl.reciprocal(jnp.sum(p, axis=1, keepdims=True), approx=True)  # (ti, R, C)
    # cosine numerator: q.w == sum_r a_r * (q.k_r) -- uses raw logits, no w tensor
    num = jnp.sum(a * s, axis=1)                                          # (ti, C)
    # ||w||^2 = a^T (K K^T) a via per-image Gram matrices
    g = jnp.einsum('tre,tse->trs', k, k, preferred_element_type=jnp.float32)  # (ti, R, R)
    ag = jnp.einsum('trs,trc->tsc', g, a, preferred_element_type=jnp.float32) # (ti, R, C)
    ww = jnp.sum(ag * a, axis=1)                                          # (ti, C)
    # cap_glob is (approximately) unit norm -> cosine = num / ||w||
    o_ref[...] = num * jax.lax.rsqrt(jnp.maximum(ww, 1e-12))


def t2i_similarity(cap_glob, img_embs, smooth, *, ti_cap=32):
    # cap_glob: (C, E) bf16; img_embs: (n_img, R, E) bf16 -> (n_img, C) f32
    n_img, R, E = img_embs.shape
    C = cap_glob.shape[0]
    budget = _vmem_budget_bytes()
    resident = C * E * 2
    per_img = 2 * R * E * 2 + 4 * R * C * 4 + R * R * 4 + 2 * C * 4
    ti = _row_tile(n_img, min(ti_cap, max(8, (budget - resident) // max(per_img, 1))))
    kern = functools.partial(_t2i_sim_kernel, smooth=float(smooth))
    return pl.pallas_call(
        kern,
        out_shape=jax.ShapeDtypeStruct((n_img, C), jnp.float32),
        grid=(pl.cdiv(n_img, ti),),
        in_specs=[
            pl.BlockSpec((C, E), lambda i: (0, 0)),         # captions: resident / reused
            pl.BlockSpec((ti, R, E), lambda i: (i, 0, 0)),  # ti images per grid step
        ],
        out_specs=pl.BlockSpec((ti, C), lambda i: (i, 0)),  # caption axis on lanes
        compiler_params=pltpu.CompilerParams(
            dimension_semantics=("parallel",),
            vmem_limit_bytes=budget),
    )(cap_glob, img_embs)


# ---------------------------------------------------------------------------
# Parameter init (matches Global2LocalModel.init_weights for nn.Linear)
# ---------------------------------------------------------------------------
def init_params(key, img_dim, word_dim, emb_dim, vocab_size):
    k1, k2, k3 = jax.random.split(key, 3)

    def lin_init(k, din, dout):
        r = jnp.sqrt(6.0) / jnp.sqrt(float(din + dout))
        w = jax.random.uniform(k, (din, dout), jnp.float32, -r, r)
        b = jnp.zeros((1, dout), jnp.float32)
        return w, b

    img_w, img_b = lin_init(k1, img_dim, emb_dim)
    cap_w, cap_b = lin_init(k2, word_dim, emb_dim)
    embed = jax.random.normal(k3, (vocab_size, word_dim), jnp.float32)
    return dict(img_w=img_w, img_b=img_b, cap_w=cap_w, cap_b=cap_b, embed=embed)


# ---------------------------------------------------------------------------
# Full forward: Global2LocalModel.forward (t2i mode)
# ---------------------------------------------------------------------------
@functools.partial(jax.jit, static_argnames=("attn_smooth",))
def global2local_forward(params, images, captions, cap_lens, *, attn_smooth=4.0):
    B_img, R, Dimg = images.shape
    E = params['img_w'].shape[1]
    img_w = params['img_w'].astype(jnp.bfloat16)
    cap_w = params['cap_w'].astype(jnp.bfloat16)

    # img_enc: Linear + per-region l2norm (bf16 out halves HBM feeding the t2i kernel)
    img_embs = linear_l2norm(
        images.reshape(B_img * R, Dimg), img_w, params['img_b']
    ).reshape(B_img, R, E)

    # cap_enc + agg_enc (fused): per-word embeddings stay in VMEM.
    # TODO(synk): original cap_enc is a GRU; replaced by a per-word linear projection.
    # TODO(synk): embedding gather stays in XLA (jnp.take); fusing it via a
    # scalar-prefetched pl.Element row-gather BlockSpec is a further optimization.
    word_vecs = jnp.take(params['embed'], captions, axis=0)          # (B_cap, L, Dw)
    cap_glob = caption_encode_aggregate(word_vecs, cap_lens, cap_w,
                                        params['cap_b'])             # (B_cap, E) bf16

    # attn_enc + sim_enc: flat-matmul cross-attention + cosine similarity
    sims = t2i_similarity(cap_glob, img_embs, attn_smooth)           # (B_img, B_cap)

    # forward(): sims.permute(1, 0)
    return sims.T                                                    # (B_cap, B_img)


if __name__ == "__main__":
    key = jax.random.PRNGKey(0)
    kp, ki, kc = jax.random.split(key, 3)

    n_image, n_regions, img_dim = 4, 8, 64
    n_caption, seq_len, word_dim = 8, 8, 64
    emb_dim, vocab = 128, 100

    params = init_params(kp, img_dim, word_dim, emb_dim, vocab)
    images = jax.random.normal(ki, (n_image, n_regions, img_dim), jnp.float32)
    captions = jax.random.randint(kc, (n_caption, seq_len), 0, vocab)
    cap_lens = jnp.array([8, 7, 6, 5, 8, 7, 6, 5], dtype=jnp.int32)

    sims = global2local_forward(params, images, captions, cap_lens)
    sims = jax.block_until_ready(sims)
    assert sims.shape == (n_caption, n_image)
    assert bool(jnp.all(jnp.isfinite(sims)))
    print("KERNEL_OK")
</pallas_src>

<mosaic_0001>
module attributes {stable_mosaic.version = 11 : i64} {
  func.func @_cap_encode_agg_kernel(%arg0: i32, %arg1: memref<8x8x64xf32, #tpu.memory_space<vmem>>, %arg2: memref<8x1xi32, #tpu.memory_space<vmem>>, %arg3: memref<64x128xbf16, #tpu.memory_space<vmem>>, %arg4: memref<1x128xf32, #tpu.memory_space<vmem>>, %arg5: memref<8x128xbf16, #tpu.memory_space<vmem>>) attributes {dimension_semantics = [#tpu.dimension_semantics<parallel>], iteration_bounds = array<i64: 1>, scalar_prefetch = 0 : i64, scratch_operands = 0 : i64, tpu.core_type = #tpu.core_type<tc>, window_params = [{transform_indices = @transform_0, window_bounds = array<i64: 8, 8, 64>}, {transform_indices = @transform_1, window_bounds = array<i64: 8, 1>}, {pipeline_mode = #tpu.pipeline_mode<synchronous>, transform_indices = @transform_2, window_bounds = array<i64: 64, 128>}, {pipeline_mode = #tpu.pipeline_mode<synchronous>, transform_indices = @transform_3, window_bounds = array<i64: 1, 128>}, {transform_indices = @transform_4, window_bounds = array<i64: 8, 128>}]} {
    %c0 = arith.constant 0 : index
    %c0_0 = arith.constant 0 : index
    %c0_1 = arith.constant 0 : index
    %0 = vector.load %arg1[%c0, %c0_0, %c0_1] : memref<8x8x64xf32, #tpu.memory_space<vmem>>, vector<8x8x64xf32>
    %1 = vector.shape_cast %0 : vector<8x8x64xf32> to vector<64x64xf32>
    %2 = arith.truncf %1 : vector<64x64xf32> to vector<64x64xbf16>
    %c0_2 = arith.constant 0 : index
    %c0_3 = arith.constant 0 : index
    %3 = vector.load %arg3[%c0_2, %c0_3] : memref<64x128xbf16, #tpu.memory_space<vmem>>, vector<64x128xbf16>
    %cst = arith.constant dense<0.000000e+00> : vector<64x128xf32>
    %4 = tpu.matmul %2, %3, %cst {dimension_numbers = #tpu.dot_dimension_numbers<[1], [0], [0], [1], [0, 0, 1, 1], [], []>} : vector<64x64xbf16>, vector<64x128xbf16>, vector<64x128xf32> -> vector<64x128xf32>
    %c0_4 = arith.constant 0 : index
    %c0_5 = arith.constant 0 : index
    %5 = vector.load %arg4[%c0_4, %c0_5] : memref<1x128xf32, #tpu.memory_space<vmem>>, vector<1x128xf32>
    %6 = vector.broadcast %5 : vector<1x128xf32> to vector<64x128xf32>
    %7 = arith.addf %4, %6 : vector<64x128xf32>
    %8 = arith.mulf %7, %7 : vector<64x128xf32>
    %cst_6 = arith.constant dense<0.000000e+00> : vector<64xf32>
    %9 = vector.multi_reduction <add>, %8, %cst_6 [1] : vector<64x128xf32> to vector<64xf32>
    %10 = vector.shape_cast %9 : vector<64xf32> to vector<64x1xf32>
    %cst_7 = arith.constant 9.99999993E-9 : f32
    %11 = vector.broadcast %cst_7 : f32 to vector<64x1xf32>
    %12 = arith.addf %10, %11 : vector<64x1xf32>
    %13 = math.rsqrt %12 : vector<64x1xf32>
    %14 = vector.broadcast %13 : vector<64x1xf32> to vector<64x128xf32>
    %15 = arith.mulf %7, %14 : vector<64x128xf32>
    %16 = vector.shape_cast %15 : vector<64x128xf32> to vector<8x8x128xf32>
    %c0_8 = arith.constant 0 : index
    %c0_9 = arith.constant 0 : index
    %17 = vector.load %arg2[%c0_8, %c0_9] : memref<8x1xi32, #tpu.memory_space<vmem>>, vector<8x1xi32>
    %18 = tpu.iota {dimensions = array<i32: 1>} : vector<8x8xi32>
    %19 = vector.broadcast %17 : vector<8x1xi32> to vector<8x8xi32>
    %20 = arith.cmpi slt, %18, %19 : vector<8x8xi32>
    %21 = arith.extui %20 : vector<8x8xi1> to vector<8x8xi32>
    %22 = arith.sitofp %21 : vector<8x8xi32> to vector<8x8xf32>
    %23 = vector.shape_cast %22 : vector<8x8xf32> to vector<8x8x1xf32>
    %24 = vector.broadcast %23 : vector<8x8x1xf32> to vector<8x8x128xf32>
    %25 = arith.mulf %16, %24 : vector<8x8x128xf32>
    %cst_10 = arith.constant dense<0.000000e+00> : vector<8x128xf32>
    %26 = vector.multi_reduction <add>, %25, %cst_10 [1] : vector<8x8x128xf32> to vector<8x128xf32>
    %27 = arith.sitofp %17 : vector<8x1xi32> to vector<8x1xf32>
    %cst_11 = arith.constant 1.000000e+00 : f32
    %28 = vector.broadcast %cst_11 : f32 to vector<8x1xf32>
    %29 = arith.maximumf %27, %28 : vector<8x1xf32>
    %30 = vector.broadcast %29 : vector<8x1xf32> to vector<8x128xf32>
    %31 = arith.divf %26, %30 : vector<8x128xf32>
    %32 = arith.mulf %31, %31 : vector<8x128xf32>
    %cst_12 = arith.constant dense<0.000000e+00> : vector<8xf32>
    %33 = vector.multi_reduction <add>, %32, %cst_12 [1] : vector<8x128xf32> to vector<8xf32>
    %34 = vector.shape_cast %33 : vector<8xf32> to vector<8x1xf32>
    %cst_13 = arith.constant 9.99999993E-9 : f32
    %35 = vector.broadcast %cst_13 : f32 to vector<8x1xf32>
    %36 = arith.addf %34, %35 : vector<8x1xf32>
    %37 = math.rsqrt %36 : vector<8x1xf32>
    %38 = vector.broadcast %37 : vector<8x1xf32> to vector<8x128xf32>
    %39 = arith.mulf %31, %38 : vector<8x128xf32>
    %40 = arith.truncf %39 : vector<8x128xf32> to vector<8x128xbf16>
    %c0_14 = arith.constant 0 : index
    %c0_15 = arith.constant 0 : index
    %41 = vector.load %arg5[%c0_14, %c0_15] : memref<8x128xbf16, #tpu.memory_space<vmem>>, vector<8x128xbf16>
    tpu.vector_store %arg5[%c0_14, %c0_15], %40 {strides = array<i32>} : memref<8x128xbf16, #tpu.memory_space<vmem>>, vector<8x128xbf16>,
    return
  }
  func.func @transform_0(%arg0: i32) -> (i32, i32, i32) {
    %c0_i32 = arith.constant 0 : i32
    %c0_i32_0 = arith.constant 0 : i32
    %c0_i32_1 = arith.constant 0 : i32
    return %arg0, %c0_i32, %c0_i32_0 : i32, i32, i32
  }
  func.func @transform_1(%arg0: i32) -> (i32, i32) {
    %c0_i32 = arith.constant 0 : i32
    %c0_i32_0 = arith.constant 0 : i32
    return %arg0, %c0_i32 : i32, i32
  }
  func.func @transform_2(%arg0: i32) -> (i32, i32) {
    %c0_i32 = arith.constant 0 : i32
    %c0_i32_0 = arith.constant 0 : i32
    %c0_i32_1 = arith.constant 0 : i32
    return %c0_i32, %c0_i32_0 : i32, i32
  }
  func.func @transform_3(%arg0: i32) -> (i32, i32) {
    %c0_i32 = arith.constant 0 : i32
    %c0_i32_0 = arith.constant 0 : i32
    %c0_i32_1 = arith.constant 0 : i32
    return %c0_i32, %c0_i32_0 : i32, i32
  }
  func.func @transform_4(%arg0: i32) -> (i32, i32) {
    %c0_i32 = arith.constant 0 : i32
    %c0_i32_0 = arith.constant 0 : i32
    return %arg0, %c0_i32 : i32, i32
  }
}

module attributes {stable_mosaic.version = 11 : i64} {
  func.func @_linear_l2norm_kernel(%arg0: i32, %arg1: memref<32x64xf32, #tpu.memory_space<vmem>>, %arg2: memref<64x128xbf16, #tpu.memory_space<vmem>>, %arg3: memref<1x128xf32, #tpu.memory_space<vmem>>, %arg4: memref<32x128xbf16, #tpu.memory_space<vmem>>) attributes {dimension_semantics = [#tpu.dimension_semantics<parallel>], iteration_bounds = array<i64: 1>, scalar_prefetch = 0 : i64, scratch_operands = 0 : i64, tpu.core_type = #tpu.core_type<tc>, window_params = [{transform_indices = @transform_0, window_bounds = array<i64: 32, 64>}, {pipeline_mode = #tpu.pipeline_mode<synchronous>, transform_indices = @transform_1, window_bounds = array<i64: 64, 128>}, {pipeline_mode = #tpu.pipeline_mode<synchronous>, transform_indices = @transform_2, window_bounds = array<i64: 1, 128>}, {transform_indices = @transform_3, window_bounds = array<i64: 32, 128>}]} {
    %c0 = arith.constant 0 : index
    %c0_0 = arith.constant 0 : index
    %0 = vector.load %arg1[%c0, %c0_0] : memref<32x64xf32, #tpu.memory_space<vmem>>, vector<32x64xf32>
    %1 = arith.truncf %0 : vector<32x64xf32> to vector<32x64xbf16>
    %c0_1 = arith.constant 0 : index
    %c0_2 = arith.constant 0 : index
    %2 = vector.load %arg2[%c0_1, %c0_2] : memref<64x128xbf16, #tpu.memory_space<vmem>>, vector<64x128xbf16>
    %cst = arith.constant dense<0.000000e+00> : vector<32x128xf32>
    %3 = tpu.matmul %1, %2, %cst {dimension_numbers = #tpu.dot_dimension_numbers<[1], [0], [0], [1], [0, 0, 1, 1], [], []>} : vector<32x64xbf16>, vector<64x128xbf16>, vector<32x128xf32> -> vector<32x128xf32>
    %c0_3 = arith.constant 0 : index
    %c0_4 = arith.constant 0 : index
    %4 = vector.load %arg3[%c0_3, %c0_4] : memref<1x128xf32, #tpu.memory_space<vmem>>, vector<1x128xf32>
    %5 = vector.broadcast %4 : vector<1x128xf32> to vector<32x128xf32>
    %6 = arith.addf %3, %5 : vector<32x128xf32>
    %7 = arith.mulf %6, %6 : vector<32x128xf32>
    %cst_5 = arith.constant dense<0.000000e+00> : vector<32xf32>
    %8 = vector.multi_reduction <add>, %7, %cst_5 [1] : vector<32x128xf32> to vector<32xf32>
    %9 = vector.shape_cast %8 : vector<32xf32> to vector<32x1xf32>
    %cst_6 = arith.constant 9.99999993E-9 : f32
    %10 = vector.broadcast %cst_6 : f32 to vector<32x1xf32>
    %11 = arith.addf %9, %10 : vector<32x1xf32>
    %12 = math.rsqrt %11 : vector<32x1xf32>
    %13 = vector.broadcast %12 : vector<32x1xf32> to vector<32x128xf32>
    %14 = arith.mulf %6, %13 : vector<32x128xf32>
    %15 = arith.truncf %14 : vector<32x128xf32> to vector<32x128xbf16>
    %c0_7 = arith.constant 0 : index
    %c0_8 = arith.constant 0 : index
    %16 = vector.load %arg4[%c0_7, %c0_8] : memref<32x128xbf16, #tpu.memory_space<vmem>>, vector<32x128xbf16>
    tpu.vector_store %arg4[%c0_7, %c0_8], %15 {strides = array<i32>} : memref<32x128xbf16, #tpu.memory_space<vmem>>, vector<32x128xbf16>,
    return
  }
  func.func @transform_0(%arg0: i32) -> (i32, i32) {
    %c0_i32 = arith.constant 0 : i32
    %c0_i32_0 = arith.constant 0 : i32
    return %arg0, %c0_i32 : i32, i32
  }
  func.func @transform_1(%arg0: i32) -> (i32, i32) {
    %c0_i32 = arith.constant 0 : i32
    %c0_i32_0 = arith.constant 0 : i32
    %c0_i32_1 = arith.constant 0 : i32
    return %c0_i32, %c0_i32_0 : i32, i32
  }
  func.func @transform_2(%arg0: i32) -> (i32, i32) {
    %c0_i32 = arith.constant 0 : i32
    %c0_i32_0 = arith.constant 0 : i32
    %c0_i32_1 = arith.constant 0 : i32
    return %c0_i32, %c0_i32_0 : i32, i32
  }
  func.func @transform_3(%arg0: i32) -> (i32, i32) {
    %c0_i32 = arith.constant 0 : i32
    %c0_i32_0 = arith.constant 0 : i32
    return %arg0, %c0_i32 : i32, i32
  }
}

module attributes {stable_mosaic.version = 11 : i64} {
  func.func @_t2i_sim_kernel(%arg0: i32, %arg1: memref<8x128xbf16, #tpu.memory_space<vmem>>, %arg2: memref<4x8x128xbf16, #tpu.memory_space<vmem>>, %arg3: memref<4x8xf32, #tpu.memory_space<vmem>>) attributes {dimension_semantics = [#tpu.dimension_semantics<parallel>], iteration_bounds = array<i64: 1>, scalar_prefetch = 0 : i64, scratch_operands = 0 : i64, tpu.core_type = #tpu.core_type<tc>, window_params = [{pipeline_mode = #tpu.pipeline_mode<synchronous>, transform_indices = @transform_0, window_bounds = array<i64: 8, 128>}, {transform_indices = @transform_1, window_bounds = array<i64: 4, 8, 128>}, {transform_indices = @transform_2, window_bounds = array<i64: 4, 8>}]} {
    %c0 = arith.constant 0 : index
    %c0_0 = arith.constant 0 : index
    %0 = vector.load %arg1[%c0, %c0_0] : memref<8x128xbf16, #tpu.memory_space<vmem>>, vector<8x128xbf16>
    %c0_1 = arith.constant 0 : index
    %c0_2 = arith.constant 0 : index
    %c0_3 = arith.constant 0 : index
    %1 = vector.load %arg2[%c0_1, %c0_2, %c0_3] : memref<4x8x128xbf16, #tpu.memory_space<vmem>>, vector<4x8x128xbf16>
    %2 = vector.shape_cast %1 : vector<4x8x128xbf16> to vector<32x128xbf16>
    %cst = arith.constant dense<0.000000e+00> : vector<32x8xf32>
    %3 = tpu.matmul %2, %0, %cst {dimension_numbers = #tpu.dot_dimension_numbers<[1], [1], [0], [0], [0, 0, 1, 0], [], []>} : vector<32x128xbf16>, vector<8x128xbf16>, vector<32x8xf32> -> vector<32x8xf32>
    %4 = vector.shape_cast %3 : vector<32x8xf32> to vector<4x8x8xf32>
    %cst_4 = arith.constant dense<0xFF800000> : vector<4x8xf32>
    %5 = vector.multi_reduction <maximumf>, %4, %cst_4 [1] : vector<4x8x8xf32> to vector<4x8xf32>
    %6 = vector.shape_cast %5 : vector<4x8xf32> to vector<4x1x8xf32>
    %7 = vector.broadcast %6 : vector<4x1x8xf32> to vector<4x8x8xf32>
    %8 = arith.subf %4, %7 : vector<4x8x8xf32>
    %cst_5 = arith.constant 4.000000e+00 : f32
    %9 = vector.broadcast %cst_5 : f32 to vector<4x8x8xf32>
    %10 = arith.mulf %8, %9 : vector<4x8x8xf32>
    %11 = math.exp %10 : vector<4x8x8xf32>
    %cst_6 = arith.constant dense<0.000000e+00> : vector<4x8xf32>
    %12 = vector.multi_reduction <add>, %11, %cst_6 [1] : vector<4x8x8xf32> to vector<4x8xf32>
    %13 = vector.shape_cast %12 : vector<4x8xf32> to vector<4x1x8xf32>
    %14 = tpu.reciprocal %13 {approx = true} : vector<4x1x8xf32> -> vector<4x1x8xf32>
    %15 = vector.broadcast %14 : vector<4x1x8xf32> to vector<4x8x8xf32>
    %16 = arith.mulf %11, %15 : vector<4x8x8xf32>
    %17 = arith.mulf %16, %4 : vector<4x8x8xf32>
    %cst_7 = arith.constant dense<0.000000e+00> : vector<4x8xf32>
    %18 = vector.multi_reduction <add>, %17, %cst_7 [1] : vector<4x8x8xf32> to vector<4x8xf32>
    "tpu.trace_start"() <{level = 10 : i32, message = "tre,tse->trs"}> : () -> ()
    %cst_8 = arith.constant dense<0.000000e+00> : vector<4x8x8xf32>
    %19 = tpu.matmul %1, %1, %cst_8 {dimension_numbers = #tpu.dot_dimension_numbers<[2], [2], [1], [1], [0, 0, 0, 1, 1, 1], [0], [0]>} : vector<4x8x128xbf16>, vector<4x8x128xbf16>, vector<4x8x8xf32> -> vector<4x8x8xf32>
    "tpu.trace_stop"() : () -> ()
    "tpu.trace_start"() <{level = 10 : i32, message = "trs,trc->tsc"}> : () -> ()
    %cst_9 = arith.constant dense<0.000000e+00> : vector<4x8x8xf32>
    %20 = tpu.matmul %19, %16, %cst_9 {dimension_numbers = #tpu.dot_dimension_numbers<[1], [1], [2], [2], [0, 0, 0, 2, 1, 2], [0], [0]>} : vector<4x8x8xf32>, vector<4x8x8xf32>, vector<4x8x8xf32> -> vector<4x8x8xf32>
    "tpu.trace_stop"() : () -> ()
    %21 = arith.mulf %20, %16 : vector<4x8x8xf32>
    %cst_10 = arith.constant dense<0.000000e+00> : vector<4x8xf32>
    %22 = vector.multi_reduction <add>, %21, %cst_10 [1] : vector<4x8x8xf32> to vector<4x8xf32>
    %cst_11 = arith.constant 9.99999996E-13 : f32
    %23 = vector.broadcast %cst_11 : f32 to vector<4x8xf32>
    %24 = arith.maximumf %22, %23 : vector<4x8xf32>
    %25 = math.rsqrt %24 : vector<4x8xf32>
    %26 = arith.mulf %18, %25 : vector<4x8xf32>
    %c0_12 = arith.constant 0 : index
    %c0_13 = arith.constant 0 : index
    %27 = vector.load %arg3[%c0_12, %c0_13] : memref<4x8xf32, #tpu.memory_space<vmem>>, vector<4x8xf32>
    tpu.vector_store %arg3[%c0_12, %c0_13], %26 {strides = array<i32>} : memref<4x8xf32, #tpu.memory_space<vmem>>, vector<4x8xf32>,
    return
  }
  func.func @transform_0(%arg0: i32) -> (i32, i32) {
    %c0_i32 = arith.constant 0 : i32
    %c0_i32_0 = arith.constant 0 : i32
    %c0_i32_1 = arith.constant 0 : i32
    return %c0_i32, %c0_i32_0 : i32, i32
  }
  func.func @transform_1(%arg0: i32) -> (i32, i32, i32) {
    %c0_i32 = arith.constant 0 : i32
    %c0_i32_0 = arith.constant 0 : i32
    %c0_i32_1 = arith.constant 0 : i32
    return %arg0, %c0_i32, %c0_i32_0 : i32, i32, i32
  }
  func.func @transform_2(%arg0: i32) -> (i32, i32) {
    %c0_i32 = arith.constant 0 : i32
    %c0_i32_0 = arith.constant 0 : i32
    return %arg0, %c0_i32 : i32, i32
  }
}

</mosaic_0001>

<bundles_post_ra>
// kernel: global2local_forward.3
= control target key start
LH: loop header
LB: loop body
LE: loop exit
PB: predicated region body
PF: predicated region fallthrough
CT: control target
= control target key end

     0   :  { %vm57_vm0 = vcmask 523264   ;;  %s264_s1 = inlined_call_operand.vmem [shape: bf16[64,128], index: 1, kind: input, shape index: {}]   ;;  %s265_s2 = inlined_call_operand.vmem [shape: f32[1,128], index: 2, kind: input, shape index: {}]   ;;  %s266_s0 = inlined_call_operand.vmem [shape: f32[32,64], index: 0, kind: input, shape index: {}]   ;;  %s267_s3 = inlined_call_operand.vmem [shape: bf16[32,128], index: 3, kind: output, shape index: {}]  }
   0x1   :  { %v176_v0 = vld [vmem:[%s264_s1 + $0x18] sm:$0xff]  ;;  %v175_v1 = vld [vmem:[%s264_s1 + $0x10] sm:$0xff]  ;;  %v174_v2 = vld [vmem:[%s264_s1 + $0x8] sm:$0xff] }
   0x2   :  { %68 = vmatpush.bf16.msra.mxu0 %v176_v0  ;;  %188 = vmatpush.bf16.msra.mxu1 %v176_v0  ;;  %v173_v3 = vld [vmem:[%s264_s1] sm:$0xff]  ;;  %v16_v5 = vld [vmem:[%s266_s0 + $0x8] sm:$0xff]  ;;  %v17_v6 = vld [vmem:[%s266_s0 + $0x10] sm:$0xff] }
   0x3   :  { %v15_v4 = vld [vmem:[%s266_s0] sm:$0xff]  ;;  %v18_v7 = vld [vmem:[%s266_s0 + $0x18] sm:$0xff] }
   0x4   :  { %v19_v8 = vpack.c.bf16 %v16_v5, %v15_v4  ;;  %v20_v9 = vpack.c.bf16 %v18_v7, %v17_v6  ;;  %v192_v10 = vld [vmem:[%s265_s2] ss:$0 sm:$0xff] }
   0x6   :  { %69 = vmatpush.bf16.msra.mxu0 %v175_v1  ;;  %189 = vmatpush.bf16.msra.mxu1 %v175_v1 }
   0xa   :  { %70 = vmatpush.bf16.msra.mxu0 %v174_v2  ;;  %190 = vmatpush.bf16.msra.mxu1 %v174_v2 }
   0xe   :  { %71 = vmatpush.bf16.msra.mxu0 %v173_v3  ;;  %191 = vmatpush.bf16.msra.mxu1 %v173_v3 }
  0x11   :  { %171 = vmatmul.msk.bf16.vlgmr.msra.gmra.mxu0 %vm57_vm0, %v19_v8  ;;  %172 = vmatmul.msk.bf16.vlgmr.msra.gmra.mxu1 %vm57_vm0, %v20_v9 }
  0x8e   :  { %v73_v11 = vpop.f32.mrf.mxu0  ;;  %v78_v12 = vpop.f32.mrf.mxu1 }
  0x8f   :  { %v248_v13 = vadd.f32 %v192_v10, %v73_v11  ;;  %v250_v14 = vadd.f32 %v192_v10, %v78_v12 }
  0x91   :  { %v85_v15 = vmul.f32 %v250_v14, %v250_v14  ;;  %v83_v16 = vmul.f32 %v248_v13, %v248_v13 }
  0x93   :  { %91 = vadd.xlane.f32.xlu1 %v85_v15  ;;  %87 = vadd.xlane.f32.xlu0 %v83_v16 }
  0x96   :  { %v75_v17 = vpop.f32.mrf.mxu0  ;;  %v80_v18 = vpop.f32.mrf.mxu1 }
  0x97   :  { %v76_v19 = vadd.f32 %v192_v10, %v75_v17  ;;  %v81_v20 = vadd.f32 %v192_v10, %v80_v18 }
  0x99   :  { %v86_v21 = vmul.f32 %v81_v20, %v81_v20  ;;  %v84_v22 = vmul.f32 %v76_v19, %v76_v19 }
  0x9b   :  { %93 = vadd.xlane.f32.xlu1 %v86_v21  ;;  %89 = vadd.xlane.f32.xlu0 %v84_v22 }
 0x106   :  { %v92_v23 = vpop.xlane.xlu1 %91  ;;  %v88_v24 = vpop.xlane.xlu0 %87 }
 0x107   :  { %v97_v25 = vadd.f32 1e-08, %v92_v23  ;;  %v95_v26 = vadd.f32 1e-08, %v88_v24 }
 0x109   :  { %193 = vrsqrt.f32 %v97_v25  ;;  %vm125_vm3 = vweird.f32 %v97_v25  ;;  %vm105_vm6 = vweird.f32 %v95_v26 }
 0x10a   :  { %195 = vrsqrt.f32 %v95_v26 }
 0x10e   :  { %v94_v27 = vpop.xlane.xlu1 %93  ;;  %v90_v28 = vpop.xlane.xlu0 %89 }
 0x10f   :  { %v194_v29 = vpop.eup %193  ;;  %v98_v30 = vadd.f32 1e-08, %v94_v27  ;;  %v96_v31 = vadd.f32 1e-08, %v90_v28 }
 0x110   :  { %v196_v32 = vpop.eup %195  ;;  %v120_v33 = vmul.f32 %v194_v29, %v97_v25  ;;  %vm126_vm1 = vweird.f32 %v194_v29 }
 0x111   :  { %v100_v34 = vmul.f32 %v196_v32, %v95_v26  ;;  %197 = vrsqrt.f32 %v98_v30  ;;  %vm106_vm2 = vweird.f32 %v196_v32  ;;  %vm127_vm5 = vmor %vm125_vm3, %vm126_vm1  ;;  %vm135_vm9 = vweird.f32 %v98_v30 }
 0x112   :  { %v121_v35 = vmul.f32 %v194_v29, %v120_v33  ;;  %199 = vrsqrt.f32 %v96_v31  ;;  %vm107_vm8 = vmor %vm105_vm6, %vm106_vm2  ;;  %vm115_vm11 = vweird.f32 %v96_v31 }
 0x113   :  { %v101_v36 = vmul.f32 %v196_v32, %v100_v34 }
 0x114   :  { %v122_v37 = vmul.f32 0.5, %v121_v35 }
 0x115   :  { %v102_v38 = vmul.f32 0.5, %v101_v36 }
 0x116   :  { %v123_v41 = vsub.f32 1.5, %v122_v37 }
 0x117   :  { %v198_v39 = vpop.eup %197  ;;  %v103_v43 = vsub.f32 1.5, %v102_v38 }
 0x118   :  { %v200_v40 = vpop.eup %199  ;;  %v130_v42 = vmul.f32 %v198_v39, %v98_v30  ;;  %v124_v47 = vmul.f32 %v194_v29, %v123_v41  ;;  %vm136_vm4 = vweird.f32 %v198_v39 }
 0x119   :  { %v110_v44 = vmul.f32 %v200_v40, %v96_v31  ;;  %v104_v49 = vmul.f32 %v196_v32, %v103_v43  ;;  %vm116_vm7 = vweird.f32 %v200_v40  ;;  %vm137_vm10 = vmor %vm135_vm9, %vm136_vm4 }
 0x11a   :  { %v131_v45 = vmul.f32 %v198_v39, %v130_v42  ;;  %v128_v53 = vsel %vm127_vm5, %v194_v29, %v124_v47  ;;  %vm117_vm12 = vmor %vm115_vm11, %vm116_vm7 }
 0x11b   :  { %v111_v46 = vmul.f32 %v200_v40, %v110_v44  ;;  %v108_v55 = vsel %vm107_vm8, %v196_v32, %v104_v49  ;;  %v141_v58 = vmul.f32 %v128_v53, %v250_v14 }
 0x11c   :  { %v132_v48 = vmul.f32 0.5, %v131_v45  ;;  %v139_v61 = vmul.f32 %v108_v55, %v248_v13 }
 0x11d   :  { %v112_v50 = vmul.f32 0.5, %v111_v46 }
 0x11e   :  { %v133_v51 = vsub.f32 1.5, %v132_v48 }
 0x11f   :  { %v113_v52 = vsub.f32 1.5, %v112_v50 }
 0x120   :  { %v134_v54 = vmul.f32 %v198_v39, %v133_v51 }
 0x121   :  { %v114_v56 = vmul.f32 %v200_v40, %v113_v52 }
 0x122   :  { %v138_v57 = vsel %vm137_vm10, %v198_v39, %v134_v54 }
 0x123   :  { %v142_v59 = vmul.f32 %v138_v57, %v81_v20  ;;  %v118_v60 = vsel %vm117_vm12, %v200_v40, %v114_v56 }
 0x124   :  { %v140_v62 = vmul.f32 %v118_v60, %v76_v19 }
 0x125   :  { %v185_v63 = vpack.c.bf16 %v142_v59, %v141_v58 }
 0x126   :  { %v180_v0 = vpack.c.bf16 %v140_v62, %v139_v61 }
 0x127   :  { %187 = vst [vmem:[%s267_s3 + $0x8] sm:$0xff] %v185_v63  }
 0x128   :  { %181 = vst [vmem:[%s267_s3] sm:$0xff] %v180_v0  }

// kernel: global2local_forward.4
= control target key start
LH: loop header
LB: loop body
LE: loop exit
PB: predicated region body
PF: predicated region fallthrough
CT: control target
= control target key end

     0   :  { %v710_v1 = vmov 0   ;;  %vm66_vm0 = vcmask 523264   ;;  %v229_v20 = vlaneseq  ;;  %v711_v46 = vmov 0.0   ;;  %s1253_s2 = inlined_call_operand.vmem [shape: bf16[64,128], index: 2, kind: input, shape index: {}]   ;;  %s1254_s1 = inlined_call_operand.vmem [shape: s32[8,1], index: 1, kind: input, shape index: {}]   ;;  %s1255_s3 = inlined_call_operand.vmem [shape: f32[1,128], index: 3, kind: input, shape index: {}]   ;;  %s1256_s0 = inlined_call_operand.vmem [shape: f32[8,8,64], index: 0, kind: input, shape index: {}]   ;;  %s1257_s4 = inlined_call_operand.vmem [shape: bf16[8,128], index: 4, kind: output, shape index: {}]  }
   0x1   :  { %v634_v0 = vld [vmem:[%s1253_s2 + $0x18] sm:$0xff]  ;;  %649 = vset.pattern.permute.xlu0 %v710_v1  ;;  %650 = vset.pattern.permute.xlu2 %v710_v1  ;;  %v633_v2 = vld [vmem:[%s1253_s2 + $0x10] sm:$0xff]  ;;  %v228_v3 = vld [vmem:[%s1254_s1] sm:$0xff] }
   0x2   :  { %83 = vmatpush.bf16.msra.mxu0 %v634_v0  ;;  %635 = vmatpush.bf16.msra.mxu1 %v634_v0  ;;  %v349_v4 = vcvt.s32.f32 %v228_v3  ;;  %v632_v5 = vld [vmem:[%s1253_s2 + $0x8] sm:$0xff]  ;;  %v631_v7 = vld [vmem:[%s1253_s2] sm:$0xff]  ;;  %v20_v10 = vld [vmem:[%s1256_s0 + $0x10] sm:$0xff]  ;;  %v239_v21 = vshrl.u32 %v229_v20, 7  ;;  %v230_v38 = vand.u32 127, %v229_v20 }
   0x3   :  { %636 = vmatpush.bf16.msra.mxu2 %v634_v0  ;;  %637 = vmatpush.bf16.msra.mxu3 %v634_v0  ;;  %v18_v8 = vld [vmem:[%s1256_s0] sm:$0xff]  ;;  %v19_v9 = vld [vmem:[%s1256_s0 + $0x8] sm:$0xff]  ;;  %v21_v11 = vld [vmem:[%s1256_s0 + $0x18] sm:$0xff] }
   0x4   :  { %232 = vperm.xlu0 %649, %v228_v3   ;;  %v350_v6 = vmax.f32 %v349_v4, 1.0  ;;  %v22_v12 = vld [vmem:[%s1256_s0 + $0x20] sm:$0xff]  ;;  %v23_v13 = vld [vmem:[%s1256_s0 + $0x28] sm:$0xff]  ;;  %v24_v14 = vld [vmem:[%s1256_s0 + $0x30] sm:$0xff]  ;;  %v26_v16 = vpack.c.bf16 %v19_v9, %v18_v8  ;;  %v27_v17 = vpack.c.bf16 %v21_v11, %v20_v10  ;;  %651 = vset.pattern.permute.xlu1 %v239_v21 }
   0x5   :  { %v25_v15 = vld [vmem:[%s1256_s0 + $0x38] sm:$0xff]  ;;  %v28_v18 = vpack.c.bf16 %v23_v13, %v22_v12  ;;  %v675_v22 = vld [vmem:[%s1255_s3] ss:$0 sm:$0xff] }
   0x6   :  { %84 = vmatpush.bf16.msra.mxu0 %v633_v2  ;;  %638 = vmatpush.bf16.msra.mxu1 %v633_v2  ;;  %v29_v19 = vpack.c.bf16 %v25_v15, %v24_v14 }
   0x7   :  { %639 = vmatpush.bf16.msra.mxu2 %v633_v2  ;;  %640 = vmatpush.bf16.msra.mxu3 %v633_v2 }
   0x8   :  { %353 = vperm.xlu2 %650, %v350_v6  }
   0xa   :  { %85 = vmatpush.bf16.msra.mxu0 %v632_v5  ;;  %641 = vmatpush.bf16.msra.mxu1 %v632_v5 }
   0xb   :  { %642 = vmatpush.bf16.msra.mxu2 %v632_v5  ;;  %643 = vmatpush.bf16.msra.mxu3 %v632_v5 }
   0xc   :  { %663 = vset.pattern.permute.xlu0 %v239_v21 }
   0xe   :  { %86 = vmatpush.bf16.msra.mxu0 %v631_v7  ;;  %644 = vmatpush.bf16.msra.mxu1 %v631_v7 }
   0xf   :  { %645 = vmatpush.bf16.msra.mxu2 %v631_v7  ;;  %646 = vmatpush.bf16.msra.mxu3 %v631_v7 }
  0x10   :  { %657 = vset.pattern.permute.xlu2 %v239_v21 }
  0x11   :  { %626 = vmatmul.msk.bf16.vlgmr.msra.gmra.mxu0 %vm66_vm0, %v26_v16  ;;  %627 = vmatmul.msk.bf16.vlgmr.msra.gmra.mxu1 %vm66_vm0, %v27_v17 }
  0x12   :  { %628 = vmatmul.msk.bf16.vlgmr.msra.gmra.mxu2 %vm66_vm0, %v28_v18  ;;  %629 = vmatmul.msk.bf16.vlgmr.msra.gmra.mxu3 %vm66_vm0, %v29_v19 }
  0x62   :  { %v814_v63 = vpop.permute.xlu2 %353 }
  0x63   :  { %v817_v0 = vrot.slane %v814_v63, 4  ;;  %v820_v2 = vrot.slane %v814_v63, 5  ;;  %676 = vrcp.f32 %v814_v63  ;;  %v833_v5 = vrot.slane %v814_v63, 1 }
  0x64   :  { %v846_v10 = vrot.slane %v814_v63, 2  ;;  %v849_v12 = vrot.slane %v814_v63, 6  ;;  %v852_v15 = vrot.slane %v814_v63, 7  ;;  %vm375_vm2 = vweird.f32 %v814_v63 }
  0x65   :  { %678 = vrcp.f32 %v817_v0  ;;  %vm435_vm4 = vweird.f32 %v817_v0  ;;  %vm450_vm6 = vweird.f32 %v820_v2  ;;  %vm390_vm0 = vweird.f32 %v833_v5 }
  0x66   :  { %680 = vrcp.f32 %v820_v2 }
  0x69   :  { %v828_v3 = vpop.eup %676 }
  0x6a   :  { %v371_v8 = vmul.f32 %v828_v3, %v814_v63  ;;  %vm376_vm3 = vweird.f32 %v828_v3 }
  0x6b   :  { %v830_v4 = vpop.eup %678  ;;  %vm892_vm8 = vmor %vm375_vm2, %vm376_vm3 }
  0x6c   :  { %v835_v6 = vpop.eup %680  ;;  %v431_v7 = vmul.f32 %v830_v4, %v817_v0  ;;  %v372_v14 = vsub.f32 1.0, %v371_v8  ;;  %vm436_vm5 = vweird.f32 %v830_v4 }
  0x6d   :  { %v446_v9 = vmul.f32 %v835_v6, %v820_v2  ;;  %vm451_vm7 = vweird.f32 %v835_v6  ;;  %vm903_vm9 = vmor %vm435_vm4, %vm436_vm5 }
  0x6e   :  { %v432_v13 = vsub.f32 1.0, %v431_v7  ;;  %v373_v20 = vmul.f32 %v828_v3, %v372_v14  ;;  %vm917_vm10 = vmor %vm450_vm6, %vm451_vm7 }
  0x6f   :  { %v447_v17 = vsub.f32 1.0, %v446_v9 }
  0x70   :  { %v433_v19 = vmul.f32 %v830_v4, %v432_v13 }
  0x76   :  { %v233_v41 = vpop.permute.xlu0 %232 }
  0x77   :  { %vm234_vm1 = vcmp.lt.s32.totalorder %v230_v38, %v233_v41  ;;  %v439_v41 = vand.u32 2147483647, %v817_v0 }
  0x78   :  { %v630_v47 = vsel %vm234_vm1, 1.0, %v711_v46 }
  0x79   :  { %v265_v49 = vperm.slane %v630_v47, 4  ;;  %v272_v50 = vperm.slane %v630_v47, 5  ;;  %v237_v54 = vperm.slane %v630_v47, 0  ;;  %v258_v55 = vperm.slane %v630_v47, 3 }
  0x7a   :  { %v244_v56 = vperm.slane %v630_v47, 1  ;;  %v251_v57 = vperm.slane %v630_v47, 2  ;;  %v279_v60 = vperm.slane %v630_v47, 6  ;;  %v286_v61 = vperm.slane %v630_v47, 7 }
  0x7b   :  { %v664_v53 = vpack.i.bf16 %v272_v50, %v265_v49  ;;  %v658_v58 = vpack.i.bf16 %v258_v55, %v237_v54  ;;  %v456_v47 = vand.u32 2147483648, %v820_v2  ;;  %v374_v49 = vadd.f32 %v828_v3, %v373_v20 }
  0x7c   :  { %v652_v59 = vpack.i.bf16 %v251_v57, %v244_v56  ;;  %v669_v62 = vpack.i.bf16 %v286_v61, %v279_v60  ;;  %vm440_vm11 = vcmp.eq.f32.partialorder %v439_v41, 8.507059e+37 }
  0x8e   :  { %v88_v23 = vpop.f32.mrf.mxu0  ;;  %v93_v24 = vpop.f32.mrf.mxu1 }
  0x8f   :  { %v781_v25 = vadd.f32 %v675_v22, %v93_v24  ;;  %v785_v27 = vadd.f32 %v675_v22, %v88_v23  ;;  %v381_v23 = vand.u32 2147483648, %v814_v63 }
  0x91   :  { %v110_v26 = vmul.f32 %v781_v25, %v781_v25  ;;  %v108_v32 = vmul.f32 %v785_v27, %v785_v27  ;;  %v382_v60 = vor.u32 1.1754944e-38, %v381_v23 }
  0x93   :  { %120 = vadd.xlane.f32.xlu1 %v110_v26 }
  0x95   :  { %v98_v28 = vpop.f32.mrf.mxu2  ;;  %v103_v33 = vpop.f32.mrf.mxu3 }
  0x96   :  { %v787_v29 = vadd.f32 %v675_v22, %v98_v28  ;;  %v90_v30 = vpop.f32.mrf.mxu0  ;;  %v797_v36 = vadd.f32 %v675_v22, %v103_v33  ;;  %v95_v42 = vpop.f32.mrf.mxu1 }
  0x97   :  { %v789_v31 = vadd.f32 %v675_v22, %v90_v30  ;;  %v805_v45 = vadd.f32 %v675_v22, %v95_v42 }
  0x98   :  { %v112_v34 = vmul.f32 %v787_v29, %v787_v29  ;;  %v114_v40 = vmul.f32 %v797_v36, %v797_v36 }
  0x99   :  { %v109_v35 = vmul.f32 %v789_v31, %v789_v31  ;;  %v111_v51 = vmul.f32 %v805_v45, %v805_v45 }
  0x9a   :  { %124 = vadd.xlane.f32.xlu2 %v112_v34  ;;  %v441_v34 = vand.u32 2147483648, %v817_v0 }
  0x9b   :  { %118 = vadd.xlane.f32.xlu0 %v109_v35  ;;  %116 = vadd.xlane.f32.xlu1 %v108_v32 }
  0x9c   :  { %v442_v55 = vor.u32 1.1754944e-38, %v441_v34 }
  0x9d   :  { %v100_v37 = vpop.f32.mrf.mxu2  ;;  %v105_v44 = vpop.f32.mrf.mxu3 }
  0x9e   :  { %v799_v39 = vadd.f32 %v675_v22, %v100_v37  ;;  %v807_v48 = vadd.f32 %v675_v22, %v105_v44  ;;  %v448_v22 = vmul.f32 %v835_v6, %v447_v17 }
  0xa0   :  { %v113_v43 = vmul.f32 %v799_v39, %v799_v39  ;;  %v115_v52 = vmul.f32 %v807_v48, %v807_v48  ;;  %v449_v46 = vadd.f32 %v835_v6, %v448_v22 }
  0xa2   :  { %128 = vadd.xlane.f32.xlu2 %v114_v40  ;;  %v434_v40 = vadd.f32 %v830_v4, %v433_v19  ;;  %v453_v57 = vsel %vm917_vm10, %v835_v6, %v449_v46  ;;  %v394_v46 = vand.u32 2147483647, %v833_v5 }
  0xa3   :  { %126 = vadd.xlane.f32.xlu1 %v113_v43 }
  0xa4   :  { %v438_v56 = vsel %vm903_vm9, %v830_v4, %v434_v40 }
  0xa5   :  { %v947_v8 = vsel %vm440_vm11, %v442_v55, %v438_v56 }
  0xaa   :  { %122 = vadd.xlane.f32.xlu2 %v111_v51 }
  0xab   :  { %130 = vadd.xlane.f32.xlu1 %v115_v52  ;;  %v454_v52 = vand.u32 2147483647, %v820_v2 }
  0xad   :  { %vm934_vm12 = vcmp.eq.f32.partialorder %v454_v52, 8.507059e+37 }
  0xaf   :  { %665 = vperm.xlu0 %663, %v664_v53   ;;  %v379_v53 = vand.u32 2147483647, %v814_v63 }
  0xb1   :  { %vm938_vm13 = vcmp.eq.f32.partialorder %v379_v53, 8.507059e+37 }
  0xb7   :  { %674 = vset.pattern.permute.xlu0 %v710_v1  ;;  %v826_v1 = vrot.slane %v814_v63, 3 }
  0xb9   :  { %682 = vrcp.f32 %v826_v1  ;;  %vm420_vm14 = vweird.f32 %v826_v1  ;;  %v426_v14 = vand.u32 2147483648, %v826_v1 }
  0xba   :  { %684 = vrcp.f32 %v833_v5 }
  0xbb   :  { %686 = vrcp.f32 %v846_v10  ;;  %v427_v44 = vor.u32 1.1754944e-38, %v426_v14 }
  0xbc   :  { %688 = vrcp.f32 %v849_v12 }
  0xbd   :  { %690 = vrcp.f32 %v852_v15 }
  0xbf   :  { %v854_v16 = vpop.eup %682 }
  0xc0   :  { %v857_v18 = vpop.eup %684  ;;  %v416_v21 = vmul.f32 %v854_v16, %v826_v1  ;;  %vm421_vm15 = vweird.f32 %v854_v16 }
  0xc1   :  { %v386_v28 = vmul.f32 %v857_v18, %v833_v5  ;;  %v880_v35 = vpop.eup %686  ;;  %vm983_vm1 = vmor %vm420_vm14, %vm421_vm15  ;;  %vm391_vm3 = vweird.f32 %v857_v18 }
  0xc2   :  { %659 = vperm.xlu2 %657, %v658_v58   ;;  %v896_v43 = vpop.eup %688  ;;  %v417_v54 = vsub.f32 1.0, %v416_v21  ;;  %v457_v58 = vor.u32 1.1754944e-38, %v456_v47  ;;  %v401_v40 = vmul.f32 %v880_v35, %v846_v10  ;;  %v396_v47 = vand.u32 2147483648, %v833_v5  ;;  %vm1029_vm7 = vmor %vm390_vm0, %vm391_vm3 }
  0xc3   :  { %v910_v50 = vpop.eup %690  ;;  %v387_v2 = vsub.f32 1.0, %v386_v28 }
  0xc4   :  { %653 = vperm.xlu1 %651, %v652_v59   ;;  %v378_v59 = vsel %vm892_vm8, %v828_v3, %v374_v49  ;;  %v418_v0 = vmul.f32 %v854_v16, %v417_v54  ;;  %v424_v3 = vand.u32 2147483647, %v826_v1  ;;  %v964_v19 = vsel %vm934_vm12, %v457_v58, %v453_v57 }
  0xc5   :  { %v968_v20 = vsel %vm938_vm13, %v382_v60, %v378_v59  ;;  %v388_v28 = vmul.f32 %v857_v18, %v387_v2  ;;  %v409_v49 = vand.u32 2147483647, %v846_v10  ;;  %v402_v60 = vsub.f32 1.0, %v401_v40 }
  0xc6   :  { %vm987_vm2 = vcmp.eq.f32.partialorder %v424_v3, 8.507059e+37 }
  0xc7   :  { %v1004_v55 = vadd.f32 %v857_v18, %v388_v28 }
  0xc9   :  { %v393_v34 = vsel %vm1029_vm7, %v857_v18, %v1004_v55  ;;  %vm507_vm7 = vcmask 1041409  }
  0xca   :  { %670 = vperm.xlu2 %657, %v669_v62  }
 0x106   :  { %v121_v11 = vpop.xlane.xlu1 %120 }
 0x107   :  { %v869_v24 = vadd.f32 1e-08, %v121_v11 }
 0x109   :  { %vm166_vm11 = vweird.f32 %v869_v24 }
 0x10d   :  { %v125_v26 = vpop.xlane.xlu2 %124 }
 0x10e   :  { %v875_v30 = vadd.f32 1e-08, %v125_v26  ;;  %v119_v32 = vpop.xlane.xlu0 %118  ;;  %v117_v33 = vpop.xlane.xlu1 %116  ;;  %v419_v26 = vadd.f32 %v854_v16, %v418_v0 }
 0x10f   :  { %v882_v37 = vadd.f32 1e-08, %v119_v32  ;;  %v884_v38 = vadd.f32 1e-08, %v117_v33 }
 0x110   :  { %692 = vrsqrt.f32 %v875_v30  ;;  %v423_v54 = vsel %vm983_vm1, %v854_v16, %v419_v26  ;;  %vm186_vm5 = vweird.f32 %v875_v30  ;;  %v1043_v26 = vor.u32 1.1754944e-38, %v396_v47 }
 0x111   :  { %694 = vrsqrt.f32 %v869_v24  ;;  %vm146_vm9 = vweird.f32 %v884_v38 }
 0x112   :  { %696 = vrsqrt.f32 %v884_v38 }
 0x113   :  { %698 = vrsqrt.f32 %v882_v37 }
 0x115   :  { %v129_v61 = vpop.xlane.xlu2 %128 }
 0x116   :  { %v943_v4 = vpop.eup %692  ;;  %v945_v6 = vadd.f32 1e-08, %v129_v61  ;;  %v127_v7 = vpop.xlane.xlu1 %126  ;;  %v411_v61 = vand.u32 2147483648, %v846_v10 }
 0x117   :  { %v951_v9 = vpop.eup %694  ;;  %v181_v11 = vmul.f32 %v943_v4, %v875_v30  ;;  %v955_v13 = vadd.f32 1e-08, %v127_v7  ;;  %vm187_vm4 = vweird.f32 %v943_v4 }
 0x118   :  { %v959_v17 = vpop.eup %696  ;;  %700 = vrsqrt.f32 %v945_v6  ;;  %v161_v32 = vmul.f32 %v951_v9, %v869_v24  ;;  %vm1033_vm8 = vmor %vm186_vm5, %vm187_vm4  ;;  %vm167_vm12 = vweird.f32 %v951_v9  ;;  %vm206_vm0 = vweird.f32 %v945_v6 }
 0x119   :  { %v971_v21 = vpop.eup %698  ;;  %v182_v22 = vmul.f32 %v943_v4, %v181_v11  ;;  %v141_v23 = vmul.f32 %v959_v17, %v884_v38  ;;  %702 = vrsqrt.f32 %v955_v13  ;;  %vm147_vm6 = vweird.f32 %v959_v17 }
 0x11a   :  { %v151_v1 = vmul.f32 %v971_v21, %v882_v37  ;;  %v162_v57 = vmul.f32 %v951_v9, %v161_v32  ;;  %vm1050_vm10 = vmor %vm146_vm9, %vm147_vm6  ;;  %vm196_vm15 = vweird.f32 %v955_v13  ;;  %vm157_vm3 = vweird.f32 %v971_v21 }
 0x11b   :  { %v183_v41 = vmul.f32 0.5, %v182_v22  ;;  %v142_v42 = vmul.f32 %v959_v17, %v141_v23  ;;  %v1041_v23 = vsel %vm987_vm2, %v427_v44, %v423_v54  ;;  %v1059_v44 = vmul.f32 %v880_v35, %v402_v60 }
 0x11c   :  { %v152_v2 = vmul.f32 %v971_v21, %v151_v1  ;;  %v163_v28 = vmul.f32 0.5, %v162_v57  ;;  %v1063_v1 = vmul.f32 %v896_v43, %v849_v12  ;;  %vm156_vm9 = vweird.f32 %v882_v37 }
 0x11d   :  { %v184_v51 = vsub.f32 1.5, %v183_v41  ;;  %v143_v52 = vmul.f32 0.5, %v142_v42  ;;  %v123_v53 = vpop.xlane.xlu2 %122 }
 0x11e   :  { %v1006_v56 = vpop.eup %700  ;;  %v1009_v58 = vadd.f32 1e-08, %v123_v53  ;;  %v131_v59 = vpop.xlane.xlu1 %130  ;;  %v153_v42 = vmul.f32 0.5, %v152_v2  ;;  %v1070_v53 = vor.u32 1.1754944e-38, %v411_v61 }
 0x11f   :  { %v144_v62 = vsub.f32 1.5, %v143_v52  ;;  %v201_v63 = vmul.f32 %v1006_v56, %v945_v6  ;;  %v1015_v16 = vadd.f32 1e-08, %v131_v59  ;;  %v703_v0 = vpop.eup %702  ;;  %v185_v7 = vmul.f32 %v943_v4, %v184_v51 }
 0x120   :  { %704 = vrsqrt.f32 %v1009_v58  ;;  %v191_v14 = vmul.f32 %v703_v0, %v955_v13  ;;  %vm197_vm13 = vweird.f32 %v703_v0  ;;  %vm207_vm14 = vweird.f32 %v1006_v56 }
 0x121   :  { %v145_v3 = vmul.f32 %v959_v17, %v144_v62  ;;  %v202_v11 = vmul.f32 %v1006_v56, %v201_v63  ;;  %706 = vrsqrt.f32 %v1015_v16  ;;  %v189_v40 = vsel %vm1033_vm8, %v943_v4, %v185_v7  ;;  %v666_v41 = vpop.permute.xlu0 %665  ;;  %vm198_vm1 = vmor %vm196_vm15, %vm197_vm13 }
 0x122   :  { %v192_v33 = vmul.f32 %v703_v0, %v191_v14  ;;  %v224_v57 = vmul.f32 %v189_v40, %v787_v29  ;;  %v667_v59 = vunpack.i.l.bf16 %v666_v41  ;;  %v164_v62 = vsub.f32 1.5, %v163_v28  ;;  %vm1087_vm2 = vmor %vm206_vm0, %vm207_vm14 }
 0x123   :  { %v203_v32 = vmul.f32 0.5, %v202_v11  ;;  %v149_v52 = vsel %vm1050_vm10, %v959_v17, %v145_v3  ;;  %v154_v17 = vsub.f32 1.5, %v153_v42  ;;  %v668_v22 = vunpack.i.h.bf16 %v666_v41  ;;  %vm1104_vm8 = vmor %vm166_vm11, %vm167_vm12 }
 0x124   :  { %v193_v47 = vmul.f32 0.5, %v192_v33  ;;  %v220_v61 = vmul.f32 %v149_v52, %v785_v27  ;;  %v297_v28 = vmul.f32 %v667_v59, %v224_v57  ;;  %v165_v33 = vmul.f32 %v951_v9, %v164_v62  ;;  %vm1116_vm11 = vmor %vm156_vm9, %vm157_vm3 }
 0x125   :  { %v204_v4 = vsub.f32 1.5, %v203_v32  ;;  %v1065_v51 = vpop.permute.xlu2 %659  ;;  %v155_v38 = vmul.f32 %v971_v21, %v154_v17  ;;  %vm176_vm4 = vweird.f32 %v1009_v58  ;;  %v462_v17 = vsub.f32 1.0, %v1063_v1 }
 0x126   :  { %v705_v54 = vpop.eup %704  ;;  %v661_v60 = vunpack.i.l.bf16 %v1065_v51  ;;  %v194_v63 = vsub.f32 1.5, %v193_v47  ;;  %vm216_vm12 = vweird.f32 %v1015_v16  ;;  %vm405_vm14 = vweird.f32 %v846_v10 }
 0x127   :  { %v171_v2 = vmul.f32 %v705_v54, %v1009_v58  ;;  %v1077_v7 = vpop.eup %706  ;;  %v205_v3 = vmul.f32 %v1006_v56, %v204_v4  ;;  %vm177_vm5 = vweird.f32 %v705_v54  ;;  %vm406_vm15 = vweird.f32 %v880_v35 }
 0x128   :  { %v211_v11 = vmul.f32 %v1077_v7, %v1015_v16  ;;  %v195_v14 = vmul.f32 %v703_v0, %v194_v63  ;;  %v293_v32 = vmul.f32 %v661_v60, %v220_v61  ;;  %vm217_vm6 = vweird.f32 %v1077_v7  ;;  %vm178_vm10 = vmor %vm176_vm4, %vm177_vm5 }
 0x129   :  { %v172_v29 = vmul.f32 %v705_v54, %v171_v2  ;;  %v209_v41 = vsel %vm1087_vm2, %v1006_v56, %v205_v3  ;;  %v169_v2 = vsel %vm1104_vm8, %v951_v9, %v165_v33  ;;  %vm1124_vm13 = vmor %vm216_vm12, %vm217_vm6  ;;  %vm465_vm0 = vweird.f32 %v849_v12 }
 0x12a   :  { %v212_v13 = vmul.f32 %v1077_v7, %v211_v11  ;;  %v199_v42 = vsel %vm198_vm1, %v703_v0, %v195_v14  ;;  %v325_v0 = vrot.slane %v297_v28, 4  ;;  %v301_v59 = vrot.slane %v293_v32, 4  ;;  %vm1175_vm8 = vmor %vm405_vm14, %vm406_vm15 }
 0x12b   :  { %v173_v27 = vmul.f32 0.5, %v172_v29  ;;  %v225_v6 = vmul.f32 %v199_v42, %v799_v39  ;;  %v226_v58 = vmul.f32 %v209_v41, %v797_v36  ;;  %v662_v29 = vunpack.i.h.bf16 %v1065_v51 }
 0x12c   :  { %v213_v47 = vmul.f32 0.5, %v212_v13  ;;  %v326_v9 = vadd.f32 %v325_v0, %v297_v28  ;;  %v302_v11 = vadd.f32 %v301_v59, %v293_v32  ;;  %vm466_vm1 = vweird.f32 %v896_v43 }
 0x12d   :  { %v174_v4 = vsub.f32 1.5, %v173_v27  ;;  %v671_v52 = vpop.permute.xlu2 %670  ;;  %v298_v57 = vmul.f32 %v668_v22, %v225_v6  ;;  %v159_v22 = vsel %vm1116_vm11, %v971_v21, %v155_v38  ;;  %v469_v51 = vand.u32 2147483647, %v849_v12  ;;  %vm1184_vm9 = vmor %vm465_vm0, %vm466_vm1 }
 0x12e   :  { %v214_v60 = vsub.f32 1.5, %v213_v47  ;;  %v672_v62 = vunpack.i.l.bf16 %v671_v52  ;;  %v673_v32 = vunpack.i.h.bf16 %v671_v52  ;;  %v222_v40 = vmul.f32 %v169_v2, %v781_v25 }
 0x12f   :  { %v175_v56 = vmul.f32 %v705_v54, %v174_v4  ;;  %v331_v63 = vrot.slane %v298_v57, 4  ;;  %v327_v27 = vrot.slane %v326_v9, 2  ;;  %v303_v42 = vrot.slane %v302_v11, 2 }
 0x130   :  { %v215_v61 = vmul.f32 %v1077_v7, %v214_v60  ;;  %v299_v37 = vmul.f32 %v672_v62, %v226_v58  ;;  %v471_v59 = vand.u32 2147483648, %v849_v12  ;;  %vm480_vm2 = vweird.f32 %v852_v15 }
 0x131   :  { %v179_v36 = vsel %vm178_vm10, %v705_v54, %v175_v56  ;;  %v332_v14 = vadd.f32 %v331_v63, %v298_v57  ;;  %v328_v25 = vadd.f32 %v327_v27, %v326_v9  ;;  %v304_v58 = vadd.f32 %v303_v42, %v302_v11 }
 0x132   :  { %v223_v1 = vmul.f32 %v179_v36, %v805_v45  ;;  %v219_v16 = vsel %vm1124_vm13, %v1077_v7, %v215_v61  ;;  %v337_v54 = vrot.slane %v299_v37, 4  ;;  %v1140_v45 = vadd.f32 %v880_v35, %v1059_v44 }
 0x133   :  { %v476_v7 = vmul.f32 %v910_v50, %v852_v15  ;;  %v227_v21 = vmul.f32 %v219_v16, %v807_v48  ;;  %v221_v44 = vmul.f32 %v159_v22, %v789_v31  ;;  %v333_v6 = vrot.slane %v332_v14, 2 }
 0x134   :  { %v296_v28 = vmul.f32 %v662_v29, %v223_v1  ;;  %v338_v33 = vadd.f32 %v337_v54, %v299_v37  ;;  %v463_v31 = vmul.f32 %v896_v43, %v462_v17  ;;  %vm1155_vm3 = vcmp.eq.f32.partialorder %v394_v46, 8.507059e+37 }
 0x135   :  { %v300_v41 = vmul.f32 %v673_v32, %v227_v21  ;;  %v477_v52 = vsub.f32 1.0, %v476_v7  ;;  %v334_v62 = vadd.f32 %v333_v6, %v332_v14  ;;  %vm1161_vm4 = vcmp.eq.f32.partialorder %v409_v49, 8.507059e+37 }
 0x136   :  { %v319_v13 = vrot.slane %v296_v28, 4  ;;  %v654_v38 = vpop.permute.xlu1 %653  ;;  %v339_v0 = vrot.slane %v338_v33, 2  ;;  %vm1165_vm5 = vcmp.eq.f32.partialorder %v469_v51, 8.507059e+37  ;;  %vm481_vm6 = vweird.f32 %v910_v50 }
 0x137   :  { %v656_v4 = vunpack.i.h.bf16 %v654_v38  ;;  %v655_v47 = vunpack.i.l.bf16 %v654_v38  ;;  %v343_v39 = vrot.slane %v300_v41, 4  ;;  %v478_v5 = vmul.f32 %v910_v50, %v477_v52  ;;  %vm1195_vm10 = vmor %vm480_vm2, %vm481_vm6 }
 0x138   :  { %v320_v57 = vadd.f32 %v319_v13, %v296_v28  ;;  %v340_v3 = vadd.f32 %v339_v0, %v338_v33  ;;  %v329_v29 = vrot.slane %v328_v25, 1  ;;  %v305_v11 = vrot.slane %v304_v58, 1 }
 0x139   :  { %v295_v48 = vmul.f32 %v656_v4, %v222_v40  ;;  %v294_v56 = vmul.f32 %v655_v47, %v221_v44  ;;  %v344_v63 = vadd.f32 %v343_v39, %v300_v41  ;;  %v464_v16 = vadd.f32 %v896_v43, %v463_v31 }
 0x13a   :  { %v321_v60 = vrot.slane %v320_v57, 2  ;;  %v335_v54 = vrot.slane %v334_v62, 1  ;;  %v341_v32 = vrot.slane %v340_v3, 1  ;;  %v479_v10 = vadd.f32 %v910_v50, %v478_v5 }
 0x13b   :  { %v313_v36 = vrot.slane %v295_v48, 4  ;;  %v307_v61 = vrot.slane %v294_v56, 4  ;;  %v345_v46 = vrot.slane %v344_v63, 2  ;;  %v484_v21 = vand.u32 2147483647, %v852_v15 }
 0x13c   :  { %v322_v37 = vadd.f32 %v321_v60, %v320_v57  ;;  %v486_v33 = vand.u32 2147483648, %v852_v15  ;;  %v330_v44 = vadd.f32 %v329_v29, %v328_v25  ;;  %v408_v38 = vsel %vm1175_vm8, %v880_v35, %v1140_v45 }
 0x13d   :  { %v314_v9 = vadd.f32 %v313_v36, %v295_v48  ;;  %v308_v1 = vadd.f32 %v307_v61, %v294_v56  ;;  %v346_v22 = vadd.f32 %v345_v46, %v344_v63  ;;  %v468_v6 = vsel %vm1184_vm9, %v896_v43, %v464_v16 }
 0x13e   :  { %v323_v49 = vrot.slane %v322_v37, 1  ;;  %v472_v41 = vor.u32 1.1754944e-38, %v471_v59  ;;  %v336_v4 = vadd.f32 %v335_v54, %v334_v62  ;;  %v306_v47 = vadd.f32 %v305_v11, %v304_v58 }
 0x13f   :  { %v315_v28 = vrot.slane %v314_v9, 2  ;;  %v309_v51 = vrot.slane %v308_v1, 2  ;;  %v347_v27 = vrot.slane %v346_v22, 1  ;;  %v342_v15 = vadd.f32 %v341_v32, %v340_v3 }
 0x140   :  { %v324_v40 = vadd.f32 %v323_v49, %v322_v37  ;;  %v483_v52 = vsel %vm1195_vm10, %v910_v50, %v479_v10  ;;  %vm485_vm11 = vcmp.eq.f32.partialorder %v484_v21, 8.507059e+37  ;;  %v487_v39 = vor.u32 1.1754944e-38, %v486_v33 }
 0x141   :  { %v316_v13 = vadd.f32 %v315_v28, %v314_v9  ;;  %v310_v42 = vadd.f32 %v309_v51, %v308_v1  ;;  %v348_v35 = vadd.f32 %v347_v27, %v346_v22  ;;  %v1213_v43 = vmul.f32 %v947_v8, %v330_v44 }
 0x142   :  { %v1210_v48 = vmul.f32 %v1041_v23, %v324_v40  ;;  %v398_v50 = vsel %vm1155_vm3, %v1043_v26, %v393_v34  ;;  %v413_v23 = vsel %vm1161_vm4, %v1070_v53, %v408_v38  ;;  %v473_v59 = vsel %vm1165_vm5, %v472_v41, %v468_v6 }
 0x143   :  { %v317_v57 = vrot.slane %v316_v13, 1  ;;  %v311_v0 = vrot.slane %v310_v42, 1  ;;  %v459_v25 = vmul.f32 %v964_v19, %v336_v4  ;;  %v384_v8 = vmul.f32 %v968_v20, %v306_v47 }
 0x144   :  { %v474_v58 = vmul.f32 %v473_v59, %v342_v15  ;;  %v488_v31 = vsel %vm485_vm11, %v487_v39, %v483_v52  ;;  %v493_v18 = vmul.f32 %v1210_v48, %v1210_v48  ;;  %v494_v53 = vmul.f32 %v1213_v43, %v1213_v43 }
 0x145   :  { %v318_v45 = vadd.f32 %v317_v57, %v316_v13  ;;  %v312_v56 = vadd.f32 %v311_v0, %v310_v42  ;;  %v489_v34 = vmul.f32 %v488_v31, %v348_v35  ;;  %vm510_vm12 = vcmask 1042434  }
 0x146   :  { %v490_v62 = vmul.f32 %v384_v8, %v384_v8  ;;  %v495_v2 = vmul.f32 %v459_v25, %v459_v25  ;;  %v496_v20 = vmul.f32 %v474_v58, %v474_v58  ;;  %vm513_vm13 = vcmask 1043459  }
 0x147   :  { %v414_v60 = vmul.f32 %v413_v23, %v318_v45  ;;  %v399_v30 = vmul.f32 %v398_v50, %v312_v56  ;;  %v497_v24 = vmul.f32 %v489_v34, %v489_v34  ;;  %v512_v61 = vrot.slane %v493_v18, 5 }
 0x148   :  { %vm516_vm14 = vcmask 1044484   ;;  %v515_v3 = vrot.slane %v494_v53, 4  ;;  %vm519_vm15 = vcmask 1045509   ;;  %v518_v5 = vrot.slane %v495_v2, 3 }
 0x149   :  { %v492_v55 = vmul.f32 %v414_v60, %v414_v60  ;;  %v491_v26 = vmul.f32 %v399_v30, %v399_v30  ;;  %vm522_vm0 = vcmask 1046534   ;;  %v521_v9 = vrot.slane %v496_v20, 2 }
 0x14a   :  { %vm525_vm1 = vcmask 1047559   ;;  %v524_v29 = vrot.slane %v497_v24, 1 }
 0x14b   :  { %v509_v63 = vrot.slane %v492_v55, 6  ;;  %v506_v19 = vrot.slane %v491_v26, 7 }
 0x14d   :  { %v508_v36 = vsel %vm507_vm7, %v506_v19, %v490_v62 }
 0x14e   :  { %v511_v37 = vsel %vm510_vm12, %v509_v63, %v508_v36 }
 0x14f   :  { %v514_v17 = vsel %vm513_vm13, %v512_v61, %v511_v37 }
 0x150   :  { %v517_v46 = vsel %vm516_vm14, %v515_v3, %v514_v17 }
 0x151   :  { %v520_v1 = vsel %vm519_vm15, %v518_v5, %v517_v46 }
 0x152   :  { %v523_v49 = vsel %vm522_vm0, %v521_v9, %v520_v1 }
 0x153   :  { %v526_v11 = vsel %vm525_vm1, %v524_v29, %v523_v49 }
 0x154   :  { %528 = vadd.xlane.f32.xlu1 %v526_v11 }
 0x1c7   :  { %v529_v14 = vpop.xlane.xlu1 %528 }
 0x1c8   :  { %v530_v16 = vadd.f32 1e-08, %v529_v14 }
 0x1ca   :  { %708 = vrsqrt.f32 %v530_v16  ;;  %vm537_vm3 = vweird.f32 %v530_v16 }
 0x1d0   :  { %v709_v54 = vpop.eup %708 }
 0x1d1   :  { %v532_v22 = vmul.f32 %v709_v54, %v530_v16  ;;  %vm538_vm2 = vweird.f32 %v709_v54 }
 0x1d2   :  { %vm539_vm4 = vmor %vm537_vm3, %vm538_vm2 }
 0x1d3   :  { %v533_v28 = vmul.f32 %v709_v54, %v532_v22 }
 0x1d5   :  { %v534_v51 = vmul.f32 0.5, %v533_v28 }
 0x1d7   :  { %v535_v7 = vsub.f32 1.5, %v534_v51 }
 0x1d9   :  { %v536_v32 = vmul.f32 %v709_v54, %v535_v7 }
 0x1db   :  { %v540_v10 = vsel %vm539_vm4, %v709_v54, %v536_v32 }
 0x1dc   :  { %v542_v21 = vrot.slane %v540_v10, 1  ;;  %v543_v33 = vrot.slane %v540_v10, 2  ;;  %v544_v40 = vrot.slane %v540_v10, 3  ;;  %v545_v27 = vrot.slane %v540_v10, 4 }
 0x1dd   :  { %v546_v13 = vrot.slane %v540_v10, 5  ;;  %v547_v42 = vrot.slane %v540_v10, 6  ;;  %v548_v12 = vrot.slane %v540_v10, 7  ;;  %v557_v44 = vmul.f32 %v540_v10, %v384_v8 }
 0x1de   :  { %v558_v38 = vmul.f32 %v542_v21, %v399_v30  ;;  %v559_v6 = vmul.f32 %v543_v33, %v414_v60  ;;  %v560_v41 = vmul.f32 %v544_v40, %v1210_v48  ;;  %v561_v4 = vmul.f32 %v545_v27, %v1213_v43 }
 0x1df   :  { %v562_v47 = vmul.f32 %v546_v13, %v459_v25  ;;  %v563_v57 = vmul.f32 %v547_v42, %v474_v58  ;;  %v564_v0 = vmul.f32 %v548_v12, %v489_v34  ;;  %v565_v15 = vpack.c.bf16 %v557_v44, %v557_v44 }
 0x1e0   :  { %v566_v52 = vpack.c.bf16 %v558_v38, %v558_v38  ;;  %v567_v39 = vpack.c.bf16 %v559_v6, %v559_v6  ;;  %v568_v35 = vpack.c.bf16 %v560_v41, %v560_v41  ;;  %v569_v45 = vpack.c.bf16 %v561_v4, %v561_v4 }
 0x1e1   :  { %v570_v56 = vpack.c.bf16 %v562_v47, %v562_v47  ;;  %v571_v50 = vpack.c.bf16 %v563_v57, %v563_v57  ;;  %v572_v23 = vpack.c.bf16 %v564_v0, %v564_v0  ;;  %v581_v60 = vunpack.c.l.b16 %v565_v15 }
 0x1e2   :  { %v582_v59 = vunpack.c.l.b16 %v566_v52  ;;  %v583_v31 = vunpack.c.l.b16 %v567_v39  ;;  %v584_v8 = vunpack.c.l.b16 %v568_v35  ;;  %v585_v30 = vunpack.c.l.b16 %v569_v45 }
 0x1e3   :  { %v586_v18 = vunpack.c.l.b16 %v570_v56  ;;  %v587_v43 = vunpack.c.l.b16 %v571_v50  ;;  %v588_v25 = vunpack.c.l.b16 %v572_v23 }
 0x1e4   :  { %v589_v48 = vrot.slane %v582_v59, 7  ;;  %v591_v55 = vrot.slane %v583_v31, 6  ;;  %v593_v26 = vrot.slane %v584_v8, 5  ;;  %v595_v53 = vrot.slane %v585_v30, 4 }
 0x1e5   :  { %v597_v63 = vrot.slane %v586_v18, 3  ;;  %v599_v2 = vrot.slane %v587_v43, 2  ;;  %v601_v24 = vrot.slane %v588_v25, 1 }
 0x1e6   :  { %v590_v58 = vsel %vm507_vm7, %v589_v48, %v581_v60 }
 0x1e7   :  { %v592_v34 = vsel %vm510_vm12, %v591_v55, %v590_v58 }
 0x1e8   :  { %v594_v62 = vsel %vm513_vm13, %v593_v26, %v592_v34 }
 0x1e9   :  { %v596_v19 = vsel %vm516_vm14, %v595_v53, %v594_v62 }
 0x1ea   :  { %v598_v20 = vsel %vm519_vm15, %v597_v63, %v596_v19 }
 0x1eb   :  { %v600_v36 = vsel %vm522_vm0, %v599_v2, %v598_v20 }
 0x1ec   :  { %v602_v61 = vsel %vm525_vm1, %v601_v24, %v600_v36 }
 0x1ed   :  { %v603_v37 = vpack.c.b16 %v602_v61, %v602_v61 }
 0x1ef   :  { %605 = vst [vmem:[%s1257_s4] sm:$0xf] %v603_v37 }

// kernel: global2local_forward.5
= control target key start
LH: loop header
LB: loop body
LE: loop exit
PB: predicated region body
PF: predicated region fallthrough
CT: control target
= control target key end

     0   :  { %s712_s0 = inlined_call_operand.vmem [shape: bf16[8,128], index: 0, kind: input, shape index: {}]   ;;  %s713_s1 = inlined_call_operand.vmem [shape: bf16[4,8,128], index: 1, kind: input, shape index: {}]   ;;  %s714_s2 = inlined_call_operand.hbm [shape: f32[4,8], index: 2, kind: output, shape index: {}]  }
   0x1   :  { %v14_v0 = vld [vmem:[%s713_s1] sm:$0xf]  ;;  %v15_v1 = vld [vmem:[%s713_s1 + $0x4] sm:$0xf]  ;;  %v16_v2 = vld [vmem:[%s713_s1 + $0x8] sm:$0xf] }
   0x2   :  { %169 = vmatpush.bf16.xpose.msra.mxu1 %v14_v0  ;;  %182 = vmatpush.bf16.xpose.msra.mxu2 %v15_v1  ;;  %v17_v3 = vld [vmem:[%s713_s1 + $0xc] sm:$0xf]  ;;  %v13_v4 = vld [vmem:[%s712_s0] sm:$0xf] }
   0x3   :  { %195 = vmatpush.bf16.xpose.msra.mxu3 %v16_v2 }
   0xa   :  { %208 = vmatpush.bf16.xpose.msrb.mxu1 %v17_v3 }
   0xb   :  { %7 = vsyncpa [#allocation3], 0  ;;  %37 = vmatpush.bf16.xpose.msra.mxu0 %v13_v4  ;;  %v555_v5 = vld [vmem:[%s713_s1] sm:$0xff]  ;;  %170 = vmatmul.bf16.vlgmr.msra.gmra.mxu1 %v14_v0  ;;  %v556_v6 = vld [vmem:[%s713_s1 + $0x8] sm:$0xff]  ;;  %vm49_vm0 = vcmask 64512   ;;  %vm518_vm10 = vcmask 1041409  }
   0xc   :  { %183 = vmatmul.bf16.vlgmr.msra.gmra.mxu2 %v15_v1  ;;  %196 = vmatmul.bf16.vlgmr.msra.gmra.mxu3 %v16_v2  ;;  %vm520_vm11 = vcmask 1042434   ;;  %s609_s0 = smov [#allocation2]   ;;  %s534_s25 = sshll.u32 %s714_s2, 4  ;;  %vm522_vm15 = vcmask 1043459   ;;  %s535_s25 = int_to_ptr.hbm [resolvable:$true] %s534_s25 }
   0xd   :  { %s532_s1 = sshll.u32 %s609_s0, 4  ;;  %s533_s1 = int_to_ptr.vmem [resolvable:$true] %s532_s1 }
  0x12   :  { %38 = vmatmul.bf16.vlgmr.msra.gmra.mxu0 %v555_v5 }
  0x1b   :  { %209 = vmatmul.bf16.vlgmr.msrb.gmra.mxu1 %v17_v3 }
  0x22   :  { %43 = vmatmul.bf16.gmra.mxu0 %v556_v6 }
  0x88   :  { %v171_v7 = vpop.f32.mrf.mxu1 }
  0x89   :  { %214 = vxpose.xlu0.b32.start.end [1/1] (short) (narrow) %v171_v7, 8 }
  0x8f   :  { %v646_v8 = vpop.f32.mrf.mxu0  ;;  %v184_v11 = vpop.f32.mrf.mxu2 }
  0x90   :  { %v50_v9 = vsel %vm49_vm0, %v646_v8, -inf  ;;  %v197_v13 = vpop.f32.mrf.mxu3  ;;  %v173_v14 = vpop.f32.mrf.mxu1 }
  0x91   :  { %v51_v10 = vrot.slane %v50_v9, 4  ;;  %324 = vxpose.xlu1.b32.start.end [1/1] (short) (narrow) %v197_v13, 8  ;;  %269 = vxpose.xlu0.b32.start.end [1/1] (short) (narrow) %v184_v11, 8 }
  0x93   :  { %v52_v12 = vmax.f32 %v50_v9, %v51_v10 }
  0x95   :  { %v53_v15 = vrot.slane %v52_v12, 2 }
  0x97   :  { %v54_v16 = vmax.f32 %v52_v12, %v53_v15  ;;  %v186_v18 = vpop.f32.mrf.mxu2  ;;  %v651_v25 = vpop.f32.mrf.mxu0 }
  0x98   :  { %v199_v20 = vpop.f32.mrf.mxu3  ;;  %v210_v21 = vpop.f32.mrf.mxu1  ;;  %v57_v27 = vsel %vm49_vm0, %v651_v25, -inf }
  0x99   :  { %v55_v17 = vrot.slane %v54_v16, 1  ;;  %379 = vxpose.xlu1.b32.start.end [1/1] (short) (narrow) %v210_v21, 8  ;;  %v58_v28 = vrot.slane %v57_v27, 4 }
  0x9b   :  { %v56_v19 = vmax.f32 %v54_v16, %v55_v17  ;;  %v59_v29 = vmax.f32 %v57_v27, %v58_v28 }
  0x9d   :  { %v78_v22 = vsub.f32 %v646_v8, %v56_v19  ;;  %v60_v32 = vrot.slane %v59_v29, 2 }
  0x9f   :  { %v82_v23 = vmul.f32 4.0, %v78_v22  ;;  %v61_v34 = vmax.f32 %v59_v29, %v60_v32  ;;  %v656_v35 = vpop.f32.mrf.mxu0 }
  0xa0   :  { %v212_v26 = vpop.f32.mrf.mxu1  ;;  %v64_v46 = vsel %vm49_vm0, %v656_v35, -inf }
  0xa1   :  { %v86_v24 = vmul.f32 1.442695, %v82_v23  ;;  %v62_v37 = vrot.slane %v61_v34, 1  ;;  %v65_v49 = vrot.slane %v64_v46, 4 }
  0xa3   :  { %559 = vpow2.f32 %v86_v24  ;;  %v63_v39 = vmax.f32 %v61_v34, %v62_v37  ;;  %v66_v51 = vmax.f32 %v64_v46, %v65_v49 }
  0xa5   :  { %v79_v41 = vsub.f32 %v651_v25, %v63_v39  ;;  %v67_v53 = vrot.slane %v66_v51, 2 }
  0xa7   :  { %v83_v43 = vmul.f32 4.0, %v79_v41  ;;  %v659_v44 = vpop.f32.mrf.mxu0  ;;  %v68_v55 = vmax.f32 %v66_v51, %v67_v53 }
  0xa8   :  { %v71_v47 = vsel %vm49_vm0, %v659_v44, -inf }
  0xa9   :  { %v560_v30 = vpop.eup %559  ;;  %v88_v48 = vmul.f32 1.442695, %v83_v43  ;;  %v72_v50 = vrot.slane %v71_v47, 4  ;;  %v69_v60 = vrot.slane %v68_v55, 1 }
  0xaa   :  { %v94_v31 = vsel %vm49_vm0, %v560_v30, 0.0 }
  0xab   :  { %v95_v33 = vrot.slane %v94_v31, 4  ;;  %v73_v52 = vmax.f32 %v71_v47, %v72_v50  ;;  %v70_v0 = vmax.f32 %v68_v55, %v69_v60 }
  0xad   :  { %v96_v36 = vadd.f32 %v95_v33, %v94_v31  ;;  %v74_v54 = vrot.slane %v73_v52, 2  ;;  %v80_v3 = vsub.f32 %v656_v35, %v70_v0 }
  0xaf   :  { %v97_v38 = vrot.slane %v96_v36, 2  ;;  %v75_v56 = vmax.f32 %v73_v52, %v74_v54  ;;  %v84_v6 = vmul.f32 4.0, %v80_v3 }
  0xb1   :  { %v98_v40 = vadd.f32 %v97_v38, %v96_v36  ;;  %v76_v61 = vrot.slane %v75_v56, 1  ;;  %v90_v10 = vmul.f32 1.442695, %v84_v6 }
  0xb3   :  { %v99_v42 = vrot.slane %v98_v40, 1  ;;  %v77_v1 = vmax.f32 %v75_v56, %v76_v61 }
  0xb5   :  { %v100_v45 = vadd.f32 %v99_v42, %v98_v40  ;;  %v81_v4 = vsub.f32 %v659_v44, %v77_v1 }
  0xb7   :  { %561 = vrcp.f32 %v100_v45  ;;  %v85_v7 = vmul.f32 4.0, %v81_v4 }
  0xb8   :  { %563 = vpow2.f32 %v88_v48 }
  0xb9   :  { %v92_v11 = vmul.f32 1.442695, %v85_v7  ;;  %565 = vpow2.f32 %v90_v10 }
  0xbb   :  { %567 = vpow2.f32 %v92_v11 }
  0xbd   :  { %v562_v57 = vpop.eup %561 }
  0xbe   :  { %v564_v58 = vpop.eup %563  ;;  %v665_v59 = vmul.f32 %v562_v57, %v560_v30 }
  0xbf   :  { %v101_v62 = vsel %vm49_vm0, %v564_v58, 0.0  ;;  %v566_v14 = vpop.eup %565 }
  0xc0   :  { %v102_v63 = vrot.slane %v101_v62, 4  ;;  %264 = vmatpush.msrb.mxu2 %v665_v59  ;;  %v108_v16 = vsel %vm49_vm0, %v566_v14, 0.0  ;;  %v130_v54 = vmul.f32 %v665_v59, %v646_v8 }
  0xc1   :  { %v568_v15 = vpop.eup %567  ;;  %v109_v17 = vrot.slane %v108_v16, 4 }
  0xc2   :  { %v103_v2 = vadd.f32 %v102_v63, %v101_v62  ;;  %v115_v18 = vsel %vm49_vm0, %v568_v15, 0.0  ;;  %v134_v0 = vsel %vm49_vm0, %v130_v54, 0.0 }
  0xc3   :  { %v116_v19 = vrot.slane %v115_v18, 4  ;;  %v110_v21 = vadd.f32 %v109_v17, %v108_v16 }
  0xc4   :  { %v104_v5 = vrot.slane %v103_v2, 2 }
  0xc5   :  { %v117_v23 = vadd.f32 %v116_v19, %v115_v18  ;;  %v111_v24 = vrot.slane %v110_v21, 2 }
  0xc6   :  { %v105_v9 = vadd.f32 %v104_v5, %v103_v2 }
  0xc7   :  { %v118_v26 = vrot.slane %v117_v23, 2  ;;  %v112_v27 = vadd.f32 %v111_v24, %v110_v21 }
  0xc8   :  { %v106_v12 = vrot.slane %v105_v9, 1 }
  0xc9   :  { %v119_v28 = vadd.f32 %v118_v26, %v117_v23  ;;  %v113_v29 = vrot.slane %v112_v27, 1 }
  0xca   :  { %v107_v13 = vadd.f32 %v106_v12, %v105_v9  ;;  %v135_v9 = vrot.slane %v134_v0, 4 }
  0xcb   :  { %v120_v30 = vrot.slane %v119_v28, 1  ;;  %v114_v31 = vadd.f32 %v113_v29, %v112_v27 }
  0xcc   :  { %569 = vrcp.f32 %v107_v13  ;;  %v136_v21 = vadd.f32 %v135_v9, %v134_v0 }
  0xcd   :  { %v121_v32 = vadd.f32 %v120_v30, %v119_v28  ;;  %571 = vrcp.f32 %v114_v31 }
  0xcf   :  { %573 = vrcp.f32 %v121_v32  ;;  %v137_v32 = vrot.slane %v136_v21, 2 }
  0xd2   :  { %v570_v20 = vpop.eup %569 }
  0xd3   :  { %v127_v22 = vmul.f32 %v570_v20, %v564_v58  ;;  %v572_v33 = vpop.eup %571 }
  0xd4   :  { %v128_v36 = vmul.f32 %v572_v33, %v566_v14 }
  0xd5   :  { %319 = vmatpush.msrb.mxu3 %v127_v22  ;;  %v574_v34 = vpop.eup %573  ;;  %v131_v1 = vmul.f32 %v127_v22, %v651_v25 }
  0xd6   :  { %v129_v37 = vmul.f32 %v574_v34, %v568_v15  ;;  %374 = vmatpush.msra.mxu2 %v128_v36  ;;  %v132_v2 = vmul.f32 %v128_v36, %v656_v35 }
  0xd7   :  { %v141_v10 = vsel %vm49_vm0, %v131_v1, 0.0 }
  0xd8   :  { %429 = vmatpush.msra.mxu3 %v129_v37  ;;  %v148_v12 = vsel %vm49_vm0, %v132_v2, 0.0  ;;  %v142_v14 = vrot.slane %v141_v10, 4  ;;  %v133_v19 = vmul.f32 %v129_v37, %v659_v44 }
  0xd9   :  { %v149_v18 = vrot.slane %v148_v12, 4 }
  0xda   :  { %v143_v27 = vadd.f32 %v142_v14, %v141_v10  ;;  %v155_v30 = vsel %vm49_vm0, %v133_v19, 0.0 }
  0xdb   :  { %v150_v29 = vadd.f32 %v149_v18, %v148_v12 }
  0xdc   :  { %v144_v34 = vrot.slane %v143_v27, 2 }
 0x12d   :  { %v230_v38 = vpop.trf.xlu0 }
 0x12e   :  { %551 = vmatmul.msk.f32.vlgmr.msrb.gmra.mxu2 %vm49_vm0, %v230_v38  ;;  %v151_v38 = vrot.slane %v150_v29, 2 }
 0x135   :  { %v340_v39 = vpop.trf.xlu1  ;;  %v285_v40 = vpop.trf.xlu0 }
 0x136   :  { %552 = vmatmul.msk.f32.vlgmr.msrb.gmra.mxu3 %vm49_vm0, %v285_v40  ;;  %553 = vmatmul.msk.f32.vlgmr.msra.gmra.mxu2 %vm49_vm0, %v340_v39  ;;  %v138_v40 = vadd.f32 %v137_v32, %v136_v21 }
 0x13d   :  { %v395_v41 = vpop.trf.xlu1 }
 0x13e   :  { %554 = vmatmul.msk.f32.vlgmr.msra.gmra.mxu3 %vm49_vm0, %v395_v41 }
 0x1b1   :  { %v266_v42 = vpop.f32.mrf.mxu2 }
 0x1b2   :  { %v434_v43 = vmul.f32 %v266_v42, %v665_v59 }
 0x1b4   :  { %v438_v45 = vsel %vm49_vm0, %v434_v43, 0.0 }
 0x1b5   :  { %v439_v46 = vrot.slane %v438_v45, 4 }
 0x1b7   :  { %v440_v47 = vadd.f32 %v439_v46, %v438_v45  ;;  %v145_v46 = vadd.f32 %v144_v34, %v143_v27 }
 0x1b9   :  { %v441_v48 = vrot.slane %v440_v47, 2  ;;  %v321_v49 = vpop.f32.mrf.mxu3  ;;  %v376_v50 = vpop.f32.mrf.mxu2 }
 0x1ba   :  { %v435_v51 = vmul.f32 %v321_v49, %v127_v22  ;;  %v436_v52 = vmul.f32 %v376_v50, %v128_v36  ;;  %v156_v36 = vrot.slane %v155_v30, 4  ;;  %v152_v49 = vadd.f32 %v151_v38, %v150_v29 }
 0x1bb   :  { %v442_v53 = vadd.f32 %v441_v48, %v440_v47 }
 0x1bc   :  { %v445_v55 = vsel %vm49_vm0, %v435_v51, 0.0  ;;  %v452_v56 = vsel %vm49_vm0, %v436_v52, 0.0  ;;  %v157_v47 = vadd.f32 %v156_v36, %v155_v30  ;;  %v139_v51 = vrot.slane %v138_v40, 1 }
 0x1bd   :  { %v443_v57 = vrot.slane %v442_v53, 1  ;;  %v446_v58 = vrot.slane %v445_v55, 4  ;;  %v453_v60 = vrot.slane %v452_v56, 4 }
 0x1bf   :  { %v444_v61 = vadd.f32 %v443_v57, %v442_v53  ;;  %v447_v62 = vadd.f32 %v446_v58, %v445_v55  ;;  %v454_v63 = vadd.f32 %v453_v60, %v452_v56  ;;  %v146_v55 = vrot.slane %v145_v46, 1 }
 0x1c0   :  { %v158_v56 = vrot.slane %v157_v47, 2  ;;  %v153_v58 = vrot.slane %v152_v49, 1 }
 0x1c1   :  { %v686_v3 = vmax.f32 %v444_v61, 1e-12  ;;  %v448_v4 = vrot.slane %v447_v62, 2  ;;  %v455_v8 = vrot.slane %v454_v63, 2  ;;  %v431_v59 = vpop.f32.mrf.mxu3 }
 0x1c2   :  { %v437_v5 = vmul.f32 %v431_v59, %v129_v37  ;;  %v159_v59 = vadd.f32 %v158_v56, %v157_v47 }
 0x1c3   :  { %575 = vrsqrt.f32 %v686_v3  ;;  %v449_v6 = vadd.f32 %v448_v4, %v447_v62  ;;  %v456_v7 = vadd.f32 %v455_v8, %v454_v63  ;;  %vm476_vm2 = vweird.f32 %v686_v3 }
 0x1c4   :  { %v459_v11 = vsel %vm49_vm0, %v437_v5, 0.0  ;;  %v140_v62 = vadd.f32 %v139_v51, %v138_v40  ;;  %v147_v8 = vadd.f32 %v146_v55, %v145_v46  ;;  %v154_v5 = vadd.f32 %v153_v58, %v152_v49 }
 0x1c5   :  { %v450_v25 = vrot.slane %v449_v6, 1  ;;  %v457_v13 = vrot.slane %v456_v7, 1  ;;  %v460_v35 = vrot.slane %v459_v11, 4  ;;  %vm525_vm0 = vcmask 60416  }
 0x1c7   :  { %v451_v15 = vadd.f32 %v450_v25, %v449_v6  ;;  %v458_v16 = vadd.f32 %v457_v13, %v456_v7  ;;  %v461_v17 = vadd.f32 %v460_v35, %v459_v11  ;;  %v160_v13 = vrot.slane %v159_v59, 1 }
 0x1c9   :  { %v693_v20 = vpop.eup %575  ;;  %v467_v22 = vmax.f32 %v451_v15, 1e-12  ;;  %v468_v23 = vmax.f32 %v458_v16, 1e-12  ;;  %v462_v24 = vrot.slane %v461_v17, 2 }
 0x1ca   :  { %v471_v26 = vmul.f32 %v693_v20, %v686_v3  ;;  %vm477_vm1 = vweird.f32 %v693_v20 }
 0x1cb   :  { %577 = vrsqrt.f32 %v467_v22  ;;  %v463_v28 = vadd.f32 %v462_v24, %v461_v17  ;;  %vm702_vm4 = vmor %vm476_vm2, %vm477_vm1  ;;  %vm486_vm6 = vweird.f32 %v467_v22  ;;  %vm496_vm8 = vweird.f32 %v468_v23 }
 0x1cc   :  { %v472_v31 = vmul.f32 %v693_v20, %v471_v26  ;;  %579 = vrsqrt.f32 %v468_v23  ;;  %v161_v17 = vadd.f32 %v160_v13, %v159_v59 }
 0x1cd   :  { %v464_v44 = vrot.slane %v463_v28, 1 }
 0x1ce   :  { %v473_v33 = vmul.f32 0.5, %v472_v31 }
 0x1cf   :  { %v465_v37 = vadd.f32 %v464_v44, %v463_v28 }
 0x1d0   :  { %v474_v43 = vsub.f32 1.5, %v473_v33 }
 0x1d1   :  { %v578_v39 = vpop.eup %577  ;;  %v469_v41 = vmax.f32 %v465_v37, 1e-12 }
 0x1d2   :  { %v580_v42 = vpop.eup %579  ;;  %v481_v45 = vmul.f32 %v578_v39, %v467_v22  ;;  %v475_v53 = vmul.f32 %v693_v20, %v474_v43  ;;  %vm487_vm3 = vweird.f32 %v578_v39 }
 0x1d3   :  { %v491_v48 = vmul.f32 %v580_v42, %v468_v23  ;;  %581 = vrsqrt.f32 %v469_v41  ;;  %vm497_vm5 = vweird.f32 %v580_v42  ;;  %vm488_vm7 = vmor %vm486_vm6, %vm487_vm3  ;;  %vm506_vm13 = vweird.f32 %v469_v41 }
 0x1d4   :  { %v482_v50 = vmul.f32 %v578_v39, %v481_v45  ;;  %v479_v4 = vsel %vm702_vm4, %v693_v20, %v475_v53  ;;  %vm498_vm9 = vmor %vm496_vm8, %vm497_vm5 }
 0x1d5   :  { %v492_v52 = vmul.f32 %v580_v42, %v491_v48  ;;  %v510_v10 = vmul.f32 %v479_v4, %v140_v62 }
 0x1d6   :  { %v483_v54 = vmul.f32 0.5, %v482_v50 }
 0x1d7   :  { %v493_v57 = vmul.f32 0.5, %v492_v52 }
 0x1d8   :  { %v484_v60 = vsub.f32 1.5, %v483_v54 }
 0x1d9   :  { %v582_v61 = vpop.eup %581  ;;  %v494_v0 = vsub.f32 1.5, %v493_v57 }
 0x1da   :  { %v485_v1 = vmul.f32 %v578_v39, %v484_v60  ;;  %v501_v2 = vmul.f32 %v582_v61, %v469_v41  ;;  %vm507_vm12 = vweird.f32 %v582_v61 }
 0x1db   :  { %v495_v3 = vmul.f32 %v580_v42, %v494_v0  ;;  %vm508_vm14 = vmor %vm506_vm13, %vm507_vm12 }
 0x1dc   :  { %v502_v6 = vmul.f32 %v582_v61, %v501_v2  ;;  %v489_v7 = vsel %vm488_vm7, %v578_v39, %v485_v1 }
 0x1dd   :  { %v499_v9 = vsel %vm498_vm9, %v580_v42, %v495_v3  ;;  %v511_v11 = vmul.f32 %v489_v7, %v147_v8 }
 0x1de   :  { %v503_v12 = vmul.f32 0.5, %v502_v6  ;;  %v512_v25 = vmul.f32 %v499_v9, %v154_v5 }
 0x1df   :  { %v519_v35 = vsel %vm518_vm10, %v511_v11, %v510_v10 }
 0x1e0   :  { %v504_v14 = vsub.f32 1.5, %v503_v12  ;;  %v521_v15 = vsel %vm520_vm11, %v512_v25, %v519_v35 }
 0x1e2   :  { %v505_v16 = vmul.f32 %v582_v61, %v504_v14 }
 0x1e4   :  { %v509_v18 = vsel %vm508_vm14, %v582_v61, %v505_v16 }
 0x1e5   :  { %v513_v19 = vmul.f32 %v509_v18, %v161_v17 }
 0x1e7   :  { %v523_v20 = vsel %vm522_vm15, %v513_v19, %v521_v15 }
 0x1e8   :  { %526 = vst.msk [vmem:[#allocation2] sm:$0xf] %vm525_vm0, %v523_v20 }
 0x1e9   :  { %537 = dma.vmem_to_hbm [thread:$0]  %s533_s1, 64, %s535_s25, [#allocation3]  }
 0x1ea   :  { %607 = dma.done.wait [#allocation3], 64  }
 0x1eb   :  { %608 = vsyncadd [#allocation3], 4294967232 }
 0x1ec   :  { %542 = vsyncpa [#allocation3], 1 }

</bundles_post_ra>
